<compile_context>
chip_gen: v5e
topology: v5e:2x2
jax: 0.10.0
libtpu: 0.0.40
codegen_flags: <defaults>
</compile_context>

<pallas_src>
import functools

import jax
import jax.numpy as jnp
from jax import lax
from jax.experimental import pallas as pl
from jax.experimental.pallas import tpu as pltpu


def _policy_net_kernel(tok_ref, h0_ref, emb_ref, w_ih_t_ref, w_hh_t_ref,
                       b_ih_ref, b_hh_ref, w_fc_t_ref, b_fc_ref,
                       logits_ref, hN_ref, h_all_ref,
                       *, seq_len, batch, hidden_size, vocab_size):
    T, B, H, V = seq_len, batch, hidden_size, vocab_size
    TB = T * B

    # --- Embedding gather as an exact one-hot MXU matmul.
    #     Rows are time-major: row index = t*B + b.
    # TODO(synk): for large vocab, replace with a DMA gather / vocab-tiled grid.
    onehot = (tok_ref[...] ==
              lax.broadcasted_iota(jnp.int32, (TB, V), 1)).astype(jnp.float32)
    x = jnp.dot(onehot, emb_ref[...],
                preferred_element_type=jnp.float32)            # (T*B, H)

    # --- Hoisted input projection: one (T*B, H) @ (H, 3H) matmul for all steps.
    gi_all = jnp.dot(x, w_ih_t_ref[...],
                     preferred_element_type=jnp.float32) + b_ih_ref[...]

    w_hh_t = w_hh_t_ref[...]
    b_hh = b_hh_ref[...]

    # --- Serial GRU recurrence, fully unrolled (static slices, full scheduler
    #     visibility).  Only the (B, H) @ (H, 3H) matmul is serial.
    # TODO(synk): for long T switch to lax.fori_loop over the VMEM scratches.
    h = h0_ref[...]                                            # (B, H)
    for t in range(T):
        gi = gi_all[t * B:(t + 1) * B, :]                      # (B, 3H) static
        gh = jnp.dot(h, w_hh_t, preferred_element_type=jnp.float32) + b_hh

        # PyTorch GRU gate ordering: reset, update, new.
        i_r, i_z, i_n = gi[:, 0:H], gi[:, H:2 * H], gi[:, 2 * H:3 * H]
        h_r, h_z, h_n = gh[:, 0:H], gh[:, H:2 * H], gh[:, 2 * H:3 * H]

        r = jax.nn.sigmoid(i_r + h_r)
        z = jax.nn.sigmoid(i_z + h_z)
        n = jnp.tanh(i_n + r * h_n)
        h = (1.0 - z) * n + z * h
        h_all_ref[:, t, :] = h                                 # batch-major

    hN_ref[...] = h                                            # final hidden

    # --- Batched output projection: one (B*T, H) @ (H, V) matmul, then a
    #     single full-block (B, T, V) store.
    h_bm = h_all_ref[...].reshape(B * T, H)
    logits = jnp.dot(h_bm, w_fc_t_ref[...],
                     preferred_element_type=jnp.float32) + b_fc_ref[...]
    logits_ref[...] = logits.reshape(B, T, V)


def policy_network_forward(x_tokens, params, hidden=None):
    """x_tokens: (B, T) int token ids. Returns (logits (B,T,V), hidden (1,B,H))."""
    emb_table = params["embedding"].astype(jnp.float32)   # (V, H)
    w_ih = params["w_ih"].astype(jnp.float32)              # (3H, H)
    w_hh = params["w_hh"].astype(jnp.float32)              # (3H, H)
    b_ih = params["b_ih"].astype(jnp.float32)              # (3H,)
    b_hh = params["b_hh"].astype(jnp.float32)              # (3H,)
    w_fc = params["w_fc"].astype(jnp.float32)              # (V, H)
    b_fc = params["b_fc"].astype(jnp.float32)              # (V,)

    B, T = x_tokens.shape
    V, H = emb_table.shape

    # Token ids, time-major (row = t*B + b), tiny (T*B, 1) int32 array.
    tok_tm = jnp.transpose(x_tokens).reshape(T * B, 1).astype(jnp.int32)

    if hidden is None:
        h0 = jnp.zeros((B, H), dtype=jnp.float32)
    else:
        h0 = hidden.reshape(B, H).astype(jnp.float32)

    # Pre-transpose weights so the kernel does plain (rows, H) @ (H, *) matmuls.
    w_ih_t = jnp.transpose(w_ih)                            # (H, 3H)
    w_hh_t = jnp.transpose(w_hh)                            # (H, 3H)
    w_fc_t = jnp.transpose(w_fc)                            # (H, V)
    b_ih2 = b_ih.reshape(1, 3 * H)
    b_hh2 = b_hh.reshape(1, 3 * H)
    b_fc2 = b_fc.reshape(1, V)

    kernel = functools.partial(_policy_net_kernel, seq_len=T, batch=B,
                               hidden_size=H, vocab_size=V)

    vmem = pl.BlockSpec(memory_space=pltpu.MemorySpace.VMEM)

    logits, h_last = pl.pallas_call(
        kernel,
        out_shape=(
            jax.ShapeDtypeStruct((B, T, V), jnp.float32),   # logits, batch-first
            jax.ShapeDtypeStruct((B, H), jnp.float32),      # final hidden
        ),
        in_specs=[vmem] * 9,
        out_specs=(vmem, vmem),
        scratch_shapes=[pltpu.VMEM((B, T, H), jnp.float32)],
    )(tok_tm, h0, emb_table, w_ih_t, w_hh_t, b_ih2, b_hh2, w_fc_t, b_fc2)

    hidden_out = h_last[None, :, :]                          # (1, B, H)
    return logits, hidden_out


def _reference_forward(x_tokens, params, hidden=None):
    """Pure-JAX reference matching PyTorch GRU semantics, for verification."""
    emb = jnp.take(params["embedding"], x_tokens, axis=0)    # (B, T, H)
    B, T, H = emb.shape
    h = jnp.zeros((B, H), jnp.float32) if hidden is None else hidden.reshape(B, H)
    w_ih, w_hh = params["w_ih"], params["w_hh"]
    b_ih, b_hh = params["b_ih"], params["b_hh"]

    def step(h, x_t):
        gi = x_t @ w_ih.T + b_ih
        gh = h @ w_hh.T + b_hh
        i_r, i_z, i_n = jnp.split(gi, 3, axis=-1)
        h_r, h_z, h_n = jnp.split(gh, 3, axis=-1)
        r = jax.nn.sigmoid(i_r + h_r)
        z = jax.nn.sigmoid(i_z + h_z)
        n = jnp.tanh(i_n + r * h_n)
        h_new = (1.0 - z) * n + z * h
        return h_new, h_new

    h_last, outs = jax.lax.scan(step, h, jnp.transpose(emb, (1, 0, 2)))
    outs = jnp.transpose(outs, (1, 0, 2))                    # (B, T, H)
    logits = outs @ params["w_fc"].T + params["b_fc"]
    return logits, h_last[None]


if __name__ == "__main__":
    # Small shapes consistent with the module: vocab=32, hidden=32, batch=2, seq=8.
    VOCAB, HIDDEN, B, T = 32, 32, 2, 8

    key = jax.random.PRNGKey(0)
    keys = jax.random.split(key, 8)
    params = {
        "embedding": jax.random.normal(keys[0], (VOCAB, HIDDEN), jnp.float32) * 0.1,
        "w_ih": jax.random.normal(keys[1], (3 * HIDDEN, HIDDEN), jnp.float32) * 0.1,
        "w_hh": jax.random.normal(keys[2], (3 * HIDDEN, HIDDEN), jnp.float32) * 0.1,
        "b_ih": jax.random.normal(keys[3], (3 * HIDDEN,), jnp.float32) * 0.1,
        "b_hh": jax.random.normal(keys[4], (3 * HIDDEN,), jnp.float32) * 0.1,
        "w_fc": jax.random.normal(keys[5], (VOCAB, HIDDEN), jnp.float32) * 0.1,
        "b_fc": jax.random.normal(keys[6], (VOCAB,), jnp.float32) * 0.1,
    }
    x_tokens = jax.random.randint(keys[7], (B, T), 0, VOCAB, dtype=jnp.int32)

    logits, hidden = jax.block_until_ready(policy_network_forward(x_tokens, params))
    ref_logits, ref_hidden = _reference_forward(x_tokens, params)

    assert logits.shape == (B, T, VOCAB), logits.shape
    assert hidden.shape == (1, B, HIDDEN), hidden.shape
    assert jnp.allclose(logits, ref_logits, atol=1e-5, rtol=1e-5)
    assert jnp.allclose(hidden, ref_hidden, atol=1e-5, rtol=1e-5)

    print("KERNEL_OK")
</pallas_src>

<mosaic_0001>
module attributes {stable_mosaic.version = 11 : i64} {
  func.func @_policy_net_kernel(%arg0: memref<16x1xi32, #tpu.memory_space<vmem>>, %arg1: memref<2x32xf32, #tpu.memory_space<vmem>>, %arg2: memref<32x32xf32, #tpu.memory_space<vmem>>, %arg3: memref<32x96xf32, #tpu.memory_space<vmem>>, %arg4: memref<32x96xf32, #tpu.memory_space<vmem>>, %arg5: memref<1x96xf32, #tpu.memory_space<vmem>>, %arg6: memref<1x96xf32, #tpu.memory_space<vmem>>, %arg7: memref<32x32xf32, #tpu.memory_space<vmem>>, %arg8: memref<1x32xf32, #tpu.memory_space<vmem>>, %arg9: memref<2x8x32xf32, #tpu.memory_space<vmem>>, %arg10: memref<2x32xf32, #tpu.memory_space<vmem>>, %arg11: memref<2x8x32xf32, #tpu.memory_space<vmem>>) attributes {dimension_semantics = [], scalar_prefetch = 0 : i64, scratch_operands = 1 : i64, tpu.core_type = #tpu.core_type<tc>} {
    %c0 = arith.constant 0 : index
    %c0_0 = arith.constant 0 : index
    %0 = vector.load %arg0[%c0, %c0_0] : memref<16x1xi32, #tpu.memory_space<vmem>>, vector<16x1xi32>
    %1 = tpu.iota {dimensions = array<i32: 1>} : vector<16x32xi32>
    %2 = vector.broadcast %0 : vector<16x1xi32> to vector<16x32xi32>
    %3 = arith.cmpi eq, %2, %1 : vector<16x32xi32>
    %4 = arith.extui %3 : vector<16x32xi1> to vector<16x32xi32>
    %5 = arith.sitofp %4 : vector<16x32xi32> to vector<16x32xf32>
    %c0_1 = arith.constant 0 : index
    %c0_2 = arith.constant 0 : index
    %6 = vector.load %arg2[%c0_1, %c0_2] : memref<32x32xf32, #tpu.memory_space<vmem>>, vector<32x32xf32>
    %cst = arith.constant dense<0.000000e+00> : vector<16x32xf32>
    %7 = tpu.matmul %5, %6, %cst {dimension_numbers = #tpu.dot_dimension_numbers<[1], [0], [0], [1], [0, 0, 1, 1], [], []>} : vector<16x32xf32>, vector<32x32xf32>, vector<16x32xf32> -> vector<16x32xf32>
    %c0_3 = arith.constant 0 : index
    %c0_4 = arith.constant 0 : index
    %8 = vector.load %arg3[%c0_3, %c0_4] : memref<32x96xf32, #tpu.memory_space<vmem>>, vector<32x96xf32>
    %cst_5 = arith.constant dense<0.000000e+00> : vector<16x96xf32>
    %9 = tpu.matmul %7, %8, %cst_5 {dimension_numbers = #tpu.dot_dimension_numbers<[1], [0], [0], [1], [0, 0, 1, 1], [], []>} : vector<16x32xf32>, vector<32x96xf32>, vector<16x96xf32> -> vector<16x96xf32>
    %c0_6 = arith.constant 0 : index
    %c0_7 = arith.constant 0 : index
    %10 = vector.load %arg5[%c0_6, %c0_7] : memref<1x96xf32, #tpu.memory_space<vmem>>, vector<1x96xf32>
    %11 = vector.broadcast %10 : vector<1x96xf32> to vector<16x96xf32>
    %12 = arith.addf %9, %11 : vector<16x96xf32>
    %c0_8 = arith.constant 0 : index
    %c0_9 = arith.constant 0 : index
    %13 = vector.load %arg4[%c0_8, %c0_9] : memref<32x96xf32, #tpu.memory_space<vmem>>, vector<32x96xf32>
    %c0_10 = arith.constant 0 : index
    %c0_11 = arith.constant 0 : index
    %14 = vector.load %arg6[%c0_10, %c0_11] : memref<1x96xf32, #tpu.memory_space<vmem>>, vector<1x96xf32>
    %c0_12 = arith.constant 0 : index
    %c0_13 = arith.constant 0 : index
    %15 = vector.load %arg1[%c0_12, %c0_13] : memref<2x32xf32, #tpu.memory_space<vmem>>, vector<2x32xf32>
    %16 = vector.extract_strided_slice %12 {offsets = [0, 0], sizes = [2, 96], strides = [1, 1]} : vector<16x96xf32> to vector<2x96xf32>
    %cst_14 = arith.constant dense<0.000000e+00> : vector<2x96xf32>
    %17 = tpu.matmul %15, %13, %cst_14 {dimension_numbers = #tpu.dot_dimension_numbers<[1], [0], [0], [1], [0, 0, 1, 1], [], []>} : vector<2x32xf32>, vector<32x96xf32>, vector<2x96xf32> -> vector<2x96xf32>
    %18 = vector.broadcast %14 : vector<1x96xf32> to vector<2x96xf32>
    %19 = arith.addf %17, %18 : vector<2x96xf32>
    %20 = vector.extract_strided_slice %16 {offsets = [0, 0], sizes = [2, 32], strides = [1, 1]} : vector<2x96xf32> to vector<2x32xf32>
    %21 = vector.extract_strided_slice %16 {offsets = [0, 32], sizes = [2, 32], strides = [1, 1]} : vector<2x96xf32> to vector<2x32xf32>
    %22 = vector.extract_strided_slice %16 {offsets = [0, 64], sizes = [2, 32], strides = [1, 1]} : vector<2x96xf32> to vector<2x32xf32>
    %23 = vector.extract_strided_slice %19 {offsets = [0, 0], sizes = [2, 32], strides = [1, 1]} : vector<2x96xf32> to vector<2x32xf32>
    %24 = vector.extract_strided_slice %19 {offsets = [0, 32], sizes = [2, 32], strides = [1, 1]} : vector<2x96xf32> to vector<2x32xf32>
    %25 = vector.extract_strided_slice %19 {offsets = [0, 64], sizes = [2, 32], strides = [1, 1]} : vector<2x96xf32> to vector<2x32xf32>
    %26 = arith.addf %20, %23 : vector<2x32xf32>
    %27 = arith.negf %26 : vector<2x32xf32>
    %28 = math.exp %27 : vector<2x32xf32>
    %cst_15 = arith.constant 1.000000e+00 : f32
    %29 = vector.broadcast %cst_15 : f32 to vector<2x32xf32>
    %30 = arith.addf %29, %28 : vector<2x32xf32>
    %31 = arith.divf %29, %30 : vector<2x32xf32>
    %32 = arith.addf %21, %24 : vector<2x32xf32>
    %33 = arith.negf %32 : vector<2x32xf32>
    %34 = math.exp %33 : vector<2x32xf32>
    %cst_16 = arith.constant 1.000000e+00 : f32
    %35 = vector.broadcast %cst_16 : f32 to vector<2x32xf32>
    %36 = arith.addf %35, %34 : vector<2x32xf32>
    %37 = arith.divf %35, %36 : vector<2x32xf32>
    %38 = arith.mulf %31, %25 : vector<2x32xf32>
    %39 = arith.addf %22, %38 : vector<2x32xf32>
    %40 = math.tanh %39 : vector<2x32xf32>
    %cst_17 = arith.constant 1.000000e+00 : f32
    %41 = vector.broadcast %cst_17 : f32 to vector<2x32xf32>
    %42 = arith.subf %41, %37 : vector<2x32xf32>
    %43 = arith.mulf %42, %40 : vector<2x32xf32>
    %44 = arith.mulf %37, %15 : vector<2x32xf32>
    %45 = arith.addf %43, %44 : vector<2x32xf32>
    %c0_18 = arith.constant 0 : index
    %c0_19 = arith.constant 0 : index
    %c0_20 = arith.constant 0 : index
    %46 = vector.load %arg11[%c0_18, %c0_19, %c0_20] : memref<2x8x32xf32, #tpu.memory_space<vmem>>, vector<2x1x32xf32>
    %47 = vector.shape_cast %46 : vector<2x1x32xf32> to vector<2x32xf32>
    %48 = vector.shape_cast %45 : vector<2x32xf32> to vector<2x1x32xf32>
    tpu.vector_store %arg11[%c0_18, %c0_19, %c0_20], %48 {strides = array<i32>} : memref<2x8x32xf32, #tpu.memory_space<vmem>>, vector<2x1x32xf32>,
    %49 = vector.extract_strided_slice %12 {offsets = [2, 0], sizes = [2, 96], strides = [1, 1]} : vector<16x96xf32> to vector<2x96xf32>
    %cst_21 = arith.constant dense<0.000000e+00> : vector<2x96xf32>
    %50 = tpu.matmul %45, %13, %cst_21 {dimension_numbers = #tpu.dot_dimension_numbers<[1], [0], [0], [1], [0, 0, 1, 1], [], []>} : vector<2x32xf32>, vector<32x96xf32>, vector<2x96xf32> -> vector<2x96xf32>
    %51 = vector.broadcast %14 : vector<1x96xf32> to vector<2x96xf32>
    %52 = arith.addf %50, %51 : vector<2x96xf32>
    %53 = vector.extract_strided_slice %49 {offsets = [0, 0], sizes = [2, 32], strides = [1, 1]} : vector<2x96xf32> to vector<2x32xf32>
    %54 = vector.extract_strided_slice %49 {offsets = [0, 32], sizes = [2, 32], strides = [1, 1]} : vector<2x96xf32> to vector<2x32xf32>
    %55 = vector.extract_strided_slice %49 {offsets = [0, 64], sizes = [2, 32], strides = [1, 1]} : vector<2x96xf32> to vector<2x32xf32>
    %56 = vector.extract_strided_slice %52 {offsets = [0, 0], sizes = [2, 32], strides = [1, 1]} : vector<2x96xf32> to vector<2x32xf32>
    %57 = vector.extract_strided_slice %52 {offsets = [0, 32], sizes = [2, 32], strides = [1, 1]} : vector<2x96xf32> to vector<2x32xf32>
    %58 = vector.extract_strided_slice %52 {offsets = [0, 64], sizes = [2, 32], strides = [1, 1]} : vector<2x96xf32> to vector<2x32xf32>
    %59 = arith.addf %53, %56 : vector<2x32xf32>
    %60 = arith.negf %59 : vector<2x32xf32>
    %61 = math.exp %60 : vector<2x32xf32>
    %cst_22 = arith.constant 1.000000e+00 : f32
    %62 = vector.broadcast %cst_22 : f32 to vector<2x32xf32>
    %63 = arith.addf %62, %61 : vector<2x32xf32>
    %64 = arith.divf %62, %63 : vector<2x32xf32>
    %65 = arith.addf %54, %57 : vector<2x32xf32>
    %66 = arith.negf %65 : vector<2x32xf32>
    %67 = math.exp %66 : vector<2x32xf32>
    %cst_23 = arith.constant 1.000000e+00 : f32
    %68 = vector.broadcast %cst_23 : f32 to vector<2x32xf32>
    %69 = arith.addf %68, %67 : vector<2x32xf32>
    %70 = arith.divf %68, %69 : vector<2x32xf32>
    %71 = arith.mulf %64, %58 : vector<2x32xf32>
    %72 = arith.addf %55, %71 : vector<2x32xf32>
    %73 = math.tanh %72 : vector<2x32xf32>
    %cst_24 = arith.constant 1.000000e+00 : f32
    %74 = vector.broadcast %cst_24 : f32 to vector<2x32xf32>
    %75 = arith.subf %74, %70 : vector<2x32xf32>
    %76 = arith.mulf %75, %73 : vector<2x32xf32>
    %77 = arith.mulf %70, %45 : vector<2x32xf32>
    %78 = arith.addf %76, %77 : vector<2x32xf32>
    %c0_25 = arith.constant 0 : index
    %c1 = arith.constant 1 : index
    %c0_26 = arith.constant 0 : index
    %79 = vector.load %arg11[%c0_25, %c1, %c0_26] : memref<2x8x32xf32, #tpu.memory_space<vmem>>, vector<2x1x32xf32>
    %80 = vector.shape_cast %79 : vector<2x1x32xf32> to vector<2x32xf32>
    %81 = vector.shape_cast %78 : vector<2x32xf32> to vector<2x1x32xf32>
    tpu.vector_store %arg11[%c0_25, %c1, %c0_26], %81 {strides = array<i32>} : memref<2x8x32xf32, #tpu.memory_space<vmem>>, vector<2x1x32xf32>,
    %82 = vector.extract_strided_slice %12 {offsets = [4, 0], sizes = [2, 96], strides = [1, 1]} : vector<16x96xf32> to vector<2x96xf32>
    %cst_27 = arith.constant dense<0.000000e+00> : vector<2x96xf32>
    %83 = tpu.matmul %78, %13, %cst_27 {dimension_numbers = #tpu.dot_dimension_numbers<[1], [0], [0], [1], [0, 0, 1, 1], [], []>} : vector<2x32xf32>, vector<32x96xf32>, vector<2x96xf32> -> vector<2x96xf32>
    %84 = vector.broadcast %14 : vector<1x96xf32> to vector<2x96xf32>
    %85 = arith.addf %83, %84 : vector<2x96xf32>
    %86 = vector.extract_strided_slice %82 {offsets = [0, 0], sizes = [2, 32], strides = [1, 1]} : vector<2x96xf32> to vector<2x32xf32>
    %87 = vector.extract_strided_slice %82 {offsets = [0, 32], sizes = [2, 32], strides = [1, 1]} : vector<2x96xf32> to vector<2x32xf32>
    %88 = vector.extract_strided_slice %82 {offsets = [0, 64], sizes = [2, 32], strides = [1, 1]} : vector<2x96xf32> to vector<2x32xf32>
    %89 = vector.extract_strided_slice %85 {offsets = [0, 0], sizes = [2, 32], strides = [1, 1]} : vector<2x96xf32> to vector<2x32xf32>
    %90 = vector.extract_strided_slice %85 {offsets = [0, 32], sizes = [2, 32], strides = [1, 1]} : vector<2x96xf32> to vector<2x32xf32>
    %91 = vector.extract_strided_slice %85 {offsets = [0, 64], sizes = [2, 32], strides = [1, 1]} : vector<2x96xf32> to vector<2x32xf32>
    %92 = arith.addf %86, %89 : vector<2x32xf32>
    %93 = arith.negf %92 : vector<2x32xf32>
    %94 = math.exp %93 : vector<2x32xf32>
    %cst_28 = arith.constant 1.000000e+00 : f32
    %95 = vector.broadcast %cst_28 : f32 to vector<2x32xf32>
    %96 = arith.addf %95, %94 : vector<2x32xf32>
    %97 = arith.divf %95, %96 : vector<2x32xf32>
    %98 = arith.addf %87, %90 : vector<2x32xf32>
    %99 = arith.negf %98 : vector<2x32xf32>
    %100 = math.exp %99 : vector<2x32xf32>
    %cst_29 = arith.constant 1.000000e+00 : f32
    %101 = vector.broadcast %cst_29 : f32 to vector<2x32xf32>
    %102 = arith.addf %101, %100 : vector<2x32xf32>
    %103 = arith.divf %101, %102 : vector<2x32xf32>
    %104 = arith.mulf %97, %91 : vector<2x32xf32>
    %105 = arith.addf %88, %104 : vector<2x32xf32>
    %106 = math.tanh %105 : vector<2x32xf32>
    %cst_30 = arith.constant 1.000000e+00 : f32
    %107 = vector.broadcast %cst_30 : f32 to vector<2x32xf32>
    %108 = arith.subf %107, %103 : vector<2x32xf32>
    %109 = arith.mulf %108, %106 : vector<2x32xf32>
    %110 = arith.mulf %103, %78 : vector<2x32xf32>
    %111 = arith.addf %109, %110 : vector<2x32xf32>
    %c0_31 = arith.constant 0 : index
    %c2 = arith.constant 2 : index
    %c0_32 = arith.constant 0 : index
    %112 = vector.load %arg11[%c0_31, %c2, %c0_32] : memref<2x8x32xf32, #tpu.memory_space<vmem>>, vector<2x1x32xf32>
    %113 = vector.shape_cast %112 : vector<2x1x32xf32> to vector<2x32xf32>
    %114 = vector.shape_cast %111 : vector<2x32xf32> to vector<2x1x32xf32>
    tpu.vector_store %arg11[%c0_31, %c2, %c0_32], %114 {strides = array<i32>} : memref<2x8x32xf32, #tpu.memory_space<vmem>>, vector<2x1x32xf32>,
    %115 = vector.extract_strided_slice %12 {offsets = [6, 0], sizes = [2, 96], strides = [1, 1]} : vector<16x96xf32> to vector<2x96xf32>
    %cst_33 = arith.constant dense<0.000000e+00> : vector<2x96xf32>
    %116 = tpu.matmul %111, %13, %cst_33 {dimension_numbers = #tpu.dot_dimension_numbers<[1], [0], [0], [1], [0, 0, 1, 1], [], []>} : vector<2x32xf32>, vector<32x96xf32>, vector<2x96xf32> -> vector<2x96xf32>
    %117 = vector.broadcast %14 : vector<1x96xf32> to vector<2x96xf32>
    %118 = arith.addf %116, %117 : vector<2x96xf32>
    %119 = vector.extract_strided_slice %115 {offsets = [0, 0], sizes = [2, 32], strides = [1, 1]} : vector<2x96xf32> to vector<2x32xf32>
    %120 = vector.extract_strided_slice %115 {offsets = [0, 32], sizes = [2, 32], strides = [1, 1]} : vector<2x96xf32> to vector<2x32xf32>
    %121 = vector.extract_strided_slice %115 {offsets = [0, 64], sizes = [2, 32], strides = [1, 1]} : vector<2x96xf32> to vector<2x32xf32>
    %122 = vector.extract_strided_slice %118 {offsets = [0, 0], sizes = [2, 32], strides = [1, 1]} : vector<2x96xf32> to vector<2x32xf32>
    %123 = vector.extract_strided_slice %118 {offsets = [0, 32], sizes = [2, 32], strides = [1, 1]} : vector<2x96xf32> to vector<2x32xf32>
    %124 = vector.extract_strided_slice %118 {offsets = [0, 64], sizes = [2, 32], strides = [1, 1]} : vector<2x96xf32> to vector<2x32xf32>
    %125 = arith.addf %119, %122 : vector<2x32xf32>
    %126 = arith.negf %125 : vector<2x32xf32>
    %127 = math.exp %126 : vector<2x32xf32>
    %cst_34 = arith.constant 1.000000e+00 : f32
    %128 = vector.broadcast %cst_34 : f32 to vector<2x32xf32>
    %129 = arith.addf %128, %127 : vector<2x32xf32>
    %130 = arith.divf %128, %129 : vector<2x32xf32>
    %131 = arith.addf %120, %123 : vector<2x32xf32>
    %132 = arith.negf %131 : vector<2x32xf32>
    %133 = math.exp %132 : vector<2x32xf32>
    %cst_35 = arith.constant 1.000000e+00 : f32
    %134 = vector.broadcast %cst_35 : f32 to vector<2x32xf32>
    %135 = arith.addf %134, %133 : vector<2x32xf32>
    %136 = arith.divf %134, %135 : vector<2x32xf32>
    %137 = arith.mulf %130, %124 : vector<2x32xf32>
    %138 = arith.addf %121, %137 : vector<2x32xf32>
    %139 = math.tanh %138 : vector<2x32xf32>
    %cst_36 = arith.constant 1.000000e+00 : f32
    %140 = vector.broadcast %cst_36 : f32 to vector<2x32xf32>
    %141 = arith.subf %140, %136 : vector<2x32xf32>
    %142 = arith.mulf %141, %139 : vector<2x32xf32>
    %143 = arith.mulf %136, %111 : vector<2x32xf32>
    %144 = arith.addf %142, %143 : vector<2x32xf32>
    %c0_37 = arith.constant 0 : index
    %c3 = arith.constant 3 : index
    %c0_38 = arith.constant 0 : index
    %145 = vector.load %arg11[%c0_37, %c3, %c0_38] : memref<2x8x32xf32, #tpu.memory_space<vmem>>, vector<2x1x32xf32>
    %146 = vector.shape_cast %145 : vector<2x1x32xf32> to vector<2x32xf32>
    %147 = vector.shape_cast %144 : vector<2x32xf32> to vector<2x1x32xf32>
    tpu.vector_store %arg11[%c0_37, %c3, %c0_38], %147 {strides = array<i32>} : memref<2x8x32xf32, #tpu.memory_space<vmem>>, vector<2x1x32xf32>,
    %148 = vector.extract_strided_slice %12 {offsets = [8, 0], sizes = [2, 96], strides = [1, 1]} : vector<16x96xf32> to vector<2x96xf32>
    %cst_39 = arith.constant dense<0.000000e+00> : vector<2x96xf32>
    %149 = tpu.matmul %144, %13, %cst_39 {dimension_numbers = #tpu.dot_dimension_numbers<[1], [0], [0], [1], [0, 0, 1, 1], [], []>} : vector<2x32xf32>, vector<32x96xf32>, vector<2x96xf32> -> vector<2x96xf32>
    %150 = vector.broadcast %14 : vector<1x96xf32> to vector<2x96xf32>
    %151 = arith.addf %149, %150 : vector<2x96xf32>
    %152 = vector.extract_strided_slice %148 {offsets = [0, 0], sizes = [2, 32], strides = [1, 1]} : vector<2x96xf32> to vector<2x32xf32>
    %153 = vector.extract_strided_slice %148 {offsets = [0, 32], sizes = [2, 32], strides = [1, 1]} : vector<2x96xf32> to vector<2x32xf32>
    %154 = vector.extract_strided_slice %148 {offsets = [0, 64], sizes = [2, 32], strides = [1, 1]} : vector<2x96xf32> to vector<2x32xf32>
    %155 = vector.extract_strided_slice %151 {offsets = [0, 0], sizes = [2, 32], strides = [1, 1]} : vector<2x96xf32> to vector<2x32xf32>
    %156 = vector.extract_strided_slice %151 {offsets = [0, 32], sizes = [2, 32], strides = [1, 1]} : vector<2x96xf32> to vector<2x32xf32>
    %157 = vector.extract_strided_slice %151 {offsets = [0, 64], sizes = [2, 32], strides = [1, 1]} : vector<2x96xf32> to vector<2x32xf32>
    %158 = arith.addf %152, %155 : vector<2x32xf32>
    %159 = arith.negf %158 : vector<2x32xf32>
    %160 = math.exp %159 : vector<2x32xf32>
    %cst_40 = arith.constant 1.000000e+00 : f32
    %161 = vector.broadcast %cst_40 : f32 to vector<2x32xf32>
    %162 = arith.addf %161, %160 : vector<2x32xf32>
    %163 = arith.divf %161, %162 : vector<2x32xf32>
    %164 = arith.addf %153, %156 : vector<2x32xf32>
    %165 = arith.negf %164 : vector<2x32xf32>
    %166 = math.exp %165 : vector<2x32xf32>
    %cst_41 = arith.constant 1.000000e+00 : f32
    %167 = vector.broadcast %cst_41 : f32 to vector<2x32xf32>
    %168 = arith.addf %167, %166 : vector<2x32xf32>
    %169 = arith.divf %167, %168 : vector<2x32xf32>
    %170 = arith.mulf %163, %157 : vector<2x32xf32>
    %171 = arith.addf %154, %170 : vector<2x32xf32>
    %172 = math.tanh %171 : vector<2x32xf32>
    %cst_42 = arith.constant 1.000000e+00 : f32
    %173 = vector.broadcast %cst_42 : f32 to vector<2x32xf32>
    %174 = arith.subf %173, %169 : vector<2x32xf32>
    %175 = arith.mulf %174, %172 : vector<2x32xf32>
    %176 = arith.mulf %169, %144 : vector<2x32xf32>
    %177 = arith.addf %175, %176 : vector<2x32xf32>
    %c0_43 = arith.constant 0 : index
    %c4 = arith.constant 4 : index
    %c0_44 = arith.constant 0 : index
    %178 = vector.load %arg11[%c0_43, %c4, %c0_44] : memref<2x8x32xf32, #tpu.memory_space<vmem>>, vector<2x1x32xf32>
    %179 = vector.shape_cast %178 : vector<2x1x32xf32> to vector<2x32xf32>
    %180 = vector.shape_cast %177 : vector<2x32xf32> to vector<2x1x32xf32>
    tpu.vector_store %arg11[%c0_43, %c4, %c0_44], %180 {strides = array<i32>} : memref<2x8x32xf32, #tpu.memory_space<vmem>>, vector<2x1x32xf32>,
    %181 = vector.extract_strided_slice %12 {offsets = [10, 0], sizes = [2, 96], strides = [1, 1]} : vector<16x96xf32> to vector<2x96xf32>
    %cst_45 = arith.constant dense<0.000000e+00> : vector<2x96xf32>
    %182 = tpu.matmul %177, %13, %cst_45 {dimension_numbers = #tpu.dot_dimension_numbers<[1], [0], [0], [1], [0, 0, 1, 1], [], []>} : vector<2x32xf32>, vector<32x96xf32>, vector<2x96xf32> -> vector<2x96xf32>
    %183 = vector.broadcast %14 : vector<1x96xf32> to vector<2x96xf32>
    %184 = arith.addf %182, %183 : vector<2x96xf32>
    %185 = vector.extract_strided_slice %181 {offsets = [0, 0], sizes = [2, 32], strides = [1, 1]} : vector<2x96xf32> to vector<2x32xf32>
    %186 = vector.extract_strided_slice %181 {offsets = [0, 32], sizes = [2, 32], strides = [1, 1]} : vector<2x96xf32> to vector<2x32xf32>
    %187 = vector.extract_strided_slice %181 {offsets = [0, 64], sizes = [2, 32], strides = [1, 1]} : vector<2x96xf32> to vector<2x32xf32>
    %188 = vector.extract_strided_slice %184 {offsets = [0, 0], sizes = [2, 32], strides = [1, 1]} : vector<2x96xf32> to vector<2x32xf32>
    %189 = vector.extract_strided_slice %184 {offsets = [0, 32], sizes = [2, 32], strides = [1, 1]} : vector<2x96xf32> to vector<2x32xf32>
    %190 = vector.extract_strided_slice %184 {offsets = [0, 64], sizes = [2, 32], strides = [1, 1]} : vector<2x96xf32> to vector<2x32xf32>
    %191 = arith.addf %185, %188 : vector<2x32xf32>
    %192 = arith.negf %191 : vector<2x32xf32>
    %193 = math.exp %192 : vector<2x32xf32>
    %cst_46 = arith.constant 1.000000e+00 : f32
    %194 = vector.broadcast %cst_46 : f32 to vector<2x32xf32>
    %195 = arith.addf %194, %193 : vector<2x32xf32>
    %196 = arith.divf %194, %195 : vector<2x32xf32>
    %197 = arith.addf %186, %189 : vector<2x32xf32>
    %198 = arith.negf %197 : vector<2x32xf32>
    %199 = math.exp %198 : vector<2x32xf32>
    %cst_47 = arith.constant 1.000000e+00 : f32
    %200 = vector.broadcast %cst_47 : f32 to vector<2x32xf32>
    %201 = arith.addf %200, %199 : vector<2x32xf32>
    %202 = arith.divf %200, %201 : vector<2x32xf32>
    %203 = arith.mulf %196, %190 : vector<2x32xf32>
    %204 = arith.addf %187, %203 : vector<2x32xf32>
    %205 = math.tanh %204 : vector<2x32xf32>
    %cst_48 = arith.constant 1.000000e+00 : f32
    %206 = vector.broadcast %cst_48 : f32 to vector<2x32xf32>
    %207 = arith.subf %206, %202 : vector<2x32xf32>
    %208 = arith.mulf %207, %205 : vector<2x32xf32>
    %209 = arith.mulf %202, %177 : vector<2x32xf32>
    %210 = arith.addf %208, %209 : vector<2x32xf32>
    %c0_49 = arith.constant 0 : index
    %c5 = arith.constant 5 : index
    %c0_50 = arith.constant 0 : index
    %211 = vector.load %arg11[%c0_49, %c5, %c0_50] : memref<2x8x32xf32, #tpu.memory_space<vmem>>, vector<2x1x32xf32>
    %212 = vector.shape_cast %211 : vector<2x1x32xf32> to vector<2x32xf32>
    %213 = vector.shape_cast %210 : vector<2x32xf32> to vector<2x1x32xf32>
    tpu.vector_store %arg11[%c0_49, %c5, %c0_50], %213 {strides = array<i32>} : memref<2x8x32xf32, #tpu.memory_space<vmem>>, vector<2x1x32xf32>,
    %214 = vector.extract_strided_slice %12 {offsets = [12, 0], sizes = [2, 96], strides = [1, 1]} : vector<16x96xf32> to vector<2x96xf32>
    %cst_51 = arith.constant dense<0.000000e+00> : vector<2x96xf32>
    %215 = tpu.matmul %210, %13, %cst_51 {dimension_numbers = #tpu.dot_dimension_numbers<[1], [0], [0], [1], [0, 0, 1, 1], [], []>} : vector<2x32xf32>, vector<32x96xf32>, vector<2x96xf32> -> vector<2x96xf32>
    %216 = vector.broadcast %14 : vector<1x96xf32> to vector<2x96xf32>
    %217 = arith.addf %215, %216 : vector<2x96xf32>
    %218 = vector.extract_strided_slice %214 {offsets = [0, 0], sizes = [2, 32], strides = [1, 1]} : vector<2x96xf32> to vector<2x32xf32>
    %219 = vector.extract_strided_slice %214 {offsets = [0, 32], sizes = [2, 32], strides = [1, 1]} : vector<2x96xf32> to vector<2x32xf32>
    %220 = vector.extract_strided_slice %214 {offsets = [0, 64], sizes = [2, 32], strides = [1, 1]} : vector<2x96xf32> to vector<2x32xf32>
    %221 = vector.extract_strided_slice %217 {offsets = [0, 0], sizes = [2, 32], strides = [1, 1]} : vector<2x96xf32> to vector<2x32xf32>
    %222 = vector.extract_strided_slice %217 {offsets = [0, 32], sizes = [2, 32], strides = [1, 1]} : vector<2x96xf32> to vector<2x32xf32>
    %223 = vector.extract_strided_slice %217 {offsets = [0, 64], sizes = [2, 32], strides = [1, 1]} : vector<2x96xf32> to vector<2x32xf32>
    %224 = arith.addf %218, %221 : vector<2x32xf32>
    %225 = arith.negf %224 : vector<2x32xf32>
    %226 = math.exp %225 : vector<2x32xf32>
    %cst_52 = arith.constant 1.000000e+00 : f32
    %227 = vector.broadcast %cst_52 : f32 to vector<2x32xf32>
    %228 = arith.addf %227, %226 : vector<2x32xf32>
    %229 = arith.divf %227, %228 : vector<2x32xf32>
    %230 = arith.addf %219, %222 : vector<2x32xf32>
    %231 = arith.negf %230 : vector<2x32xf32>
    %232 = math.exp %231 : vector<2x32xf32>
    %cst_53 = arith.constant 1.000000e+00 : f32
    %233 = vector.broadcast %cst_53 : f32 to vector<2x32xf32>
    %234 = arith.addf %233, %232 : vector<2x32xf32>
    %235 = arith.divf %233, %234 : vector<2x32xf32>
    %236 = arith.mulf %229, %223 : vector<2x32xf32>
    %237 = arith.addf %220, %236 : vector<2x32xf32>
    %238 = math.tanh %237 : vector<2x32xf32>
    %cst_54 = arith.constant 1.000000e+00 : f32
    %239 = vector.broadcast %cst_54 : f32 to vector<2x32xf32>
    %240 = arith.subf %239, %235 : vector<2x32xf32>
    %241 = arith.mulf %240, %238 : vector<2x32xf32>
    %242 = arith.mulf %235, %210 : vector<2x32xf32>
    %243 = arith.addf %241, %242 : vector<2x32xf32>
    %c0_55 = arith.constant 0 : index
    %c6 = arith.constant 6 : index
    %c0_56 = arith.constant 0 : index
    %244 = vector.load %arg11[%c0_55, %c6, %c0_56] : memref<2x8x32xf32, #tpu.memory_space<vmem>>, vector<2x1x32xf32>
    %245 = vector.shape_cast %244 : vector<2x1x32xf32> to vector<2x32xf32>
    %246 = vector.shape_cast %243 : vector<2x32xf32> to vector<2x1x32xf32>
    tpu.vector_store %arg11[%c0_55, %c6, %c0_56], %246 {strides = array<i32>} : memref<2x8x32xf32, #tpu.memory_space<vmem>>, vector<2x1x32xf32>,
    %247 = vector.extract_strided_slice %12 {offsets = [14, 0], sizes = [2, 96], strides = [1, 1]} : vector<16x96xf32> to vector<2x96xf32>
    %cst_57 = arith.constant dense<0.000000e+00> : vector<2x96xf32>
    %248 = tpu.matmul %243, %13, %cst_57 {dimension_numbers = #tpu.dot_dimension_numbers<[1], [0], [0], [1], [0, 0, 1, 1], [], []>} : vector<2x32xf32>, vector<32x96xf32>, vector<2x96xf32> -> vector<2x96xf32>
    %249 = vector.broadcast %14 : vector<1x96xf32> to vector<2x96xf32>
    %250 = arith.addf %248, %249 : vector<2x96xf32>
    %251 = vector.extract_strided_slice %247 {offsets = [0, 0], sizes = [2, 32], strides = [1, 1]} : vector<2x96xf32> to vector<2x32xf32>
    %252 = vector.extract_strided_slice %247 {offsets = [0, 32], sizes = [2, 32], strides = [1, 1]} : vector<2x96xf32> to vector<2x32xf32>
    %253 = vector.extract_strided_slice %247 {offsets = [0, 64], sizes = [2, 32], strides = [1, 1]} : vector<2x96xf32> to vector<2x32xf32>
    %254 = vector.extract_strided_slice %250 {offsets = [0, 0], sizes = [2, 32], strides = [1, 1]} : vector<2x96xf32> to vector<2x32xf32>
    %255 = vector.extract_strided_slice %250 {offsets = [0, 32], sizes = [2, 32], strides = [1, 1]} : vector<2x96xf32> to vector<2x32xf32>
    %256 = vector.extract_strided_slice %250 {offsets = [0, 64], sizes = [2, 32], strides = [1, 1]} : vector<2x96xf32> to vector<2x32xf32>
    %257 = arith.addf %251, %254 : vector<2x32xf32>
    %258 = arith.negf %257 : vector<2x32xf32>
    %259 = math.exp %258 : vector<2x32xf32>
    %cst_58 = arith.constant 1.000000e+00 : f32
    %260 = vector.broadcast %cst_58 : f32 to vector<2x32xf32>
    %261 = arith.addf %260, %259 : vector<2x32xf32>
    %262 = arith.divf %260, %261 : vector<2x32xf32>
    %263 = arith.addf %252, %255 : vector<2x32xf32>
    %264 = arith.negf %263 : vector<2x32xf32>
    %265 = math.exp %264 : vector<2x32xf32>
    %cst_59 = arith.constant 1.000000e+00 : f32
    %266 = vector.broadcast %cst_59 : f32 to vector<2x32xf32>
    %267 = arith.addf %266, %265 : vector<2x32xf32>
    %268 = arith.divf %266, %267 : vector<2x32xf32>
    %269 = arith.mulf %262, %256 : vector<2x32xf32>
    %270 = arith.addf %253, %269 : vector<2x32xf32>
    %271 = math.tanh %270 : vector<2x32xf32>
    %cst_60 = arith.constant 1.000000e+00 : f32
    %272 = vector.broadcast %cst_60 : f32 to vector<2x32xf32>
    %273 = arith.subf %272, %268 : vector<2x32xf32>
    %274 = arith.mulf %273, %271 : vector<2x32xf32>
    %275 = arith.mulf %268, %243 : vector<2x32xf32>
    %276 = arith.addf %274, %275 : vector<2x32xf32>
    %c0_61 = arith.constant 0 : index
    %c7 = arith.constant 7 : index
    %c0_62 = arith.constant 0 : index
    %277 = vector.load %arg11[%c0_61, %c7, %c0_62] : memref<2x8x32xf32, #tpu.memory_space<vmem>>, vector<2x1x32xf32>
    %278 = vector.shape_cast %277 : vector<2x1x32xf32> to vector<2x32xf32>
    %279 = vector.shape_cast %276 : vector<2x32xf32> to vector<2x1x32xf32>
    tpu.vector_store %arg11[%c0_61, %c7, %c0_62], %279 {strides = array<i32>} : memref<2x8x32xf32, #tpu.memory_space<vmem>>, vector<2x1x32xf32>,
    %c0_63 = arith.constant 0 : index
    %c0_64 = arith.constant 0 : index
    %280 = vector.load %arg10[%c0_63, %c0_64] : memref<2x32xf32, #tpu.memory_space<vmem>>, vector<2x32xf32>
    tpu.vector_store %arg10[%c0_63, %c0_64], %276 {strides = array<i32>} : memref<2x32xf32, #tpu.memory_space<vmem>>, vector<2x32xf32>,
    %c0_65 = arith.constant 0 : index
    %c0_66 = arith.constant 0 : index
    %c0_67 = arith.constant 0 : index
    %281 = vector.load %arg11[%c0_65, %c0_66, %c0_67] : memref<2x8x32xf32, #tpu.memory_space<vmem>>, vector<2x8x32xf32>
    %282 = vector.shape_cast %281 : vector<2x8x32xf32> to vector<16x32xf32>
    %c0_68 = arith.constant 0 : index
    %c0_69 = arith.constant 0 : index
    %283 = vector.load %arg7[%c0_68, %c0_69] : memref<32x32xf32, #tpu.memory_space<vmem>>, vector<32x32xf32>
    %cst_70 = arith.constant dense<0.000000e+00> : vector<16x32xf32>
    %284 = tpu.matmul %282, %283, %cst_70 {dimension_numbers = #tpu.dot_dimension_numbers<[1], [0], [0], [1], [0, 0, 1, 1], [], []>} : vector<16x32xf32>, vector<32x32xf32>, vector<16x32xf32> -> vector<16x32xf32>
    %c0_71 = arith.constant 0 : index
    %c0_72 = arith.constant 0 : index
    %285 = vector.load %arg8[%c0_71, %c0_72] : memref<1x32xf32, #tpu.memory_space<vmem>>, vector<1x32xf32>
    %286 = vector.broadcast %285 : vector<1x32xf32> to vector<16x32xf32>
    %287 = arith.addf %284, %286 : vector<16x32xf32>
    %288 = vector.shape_cast %287 : vector<16x32xf32> to vector<2x8x32xf32>
    %c0_73 = arith.constant 0 : index
    %c0_74 = arith.constant 0 : index
    %c0_75 = arith.constant 0 : index
    %289 = vector.load %arg9[%c0_73, %c0_74, %c0_75] : memref<2x8x32xf32, #tpu.memory_space<vmem>>, vector<2x8x32xf32>
    tpu.vector_store %arg9[%c0_73, %c0_74, %c0_75], %288 {strides = array<i32>} : memref<2x8x32xf32, #tpu.memory_space<vmem>>, vector<2x8x32xf32>,
    return
  }
}

</mosaic_0001>

<bundles_post_ra>
// kernel: tpu_custom_call.1
= control target key start
LH: loop header
LB: loop body
LE: loop exit
PB: predicated region body
PF: predicated region fallthrough
CT: control target
= control target key end

     0   :  { %16 = vsyncpa [#allocation4], 0  ;;  %s1497_s0 = inlined_call_operand.vmem [shape: s32[16,1], index: 0, kind: input, shape index: {}]   ;;  %s1498_s1 = inlined_call_operand.vmem [shape: f32[2,32], index: 1, kind: input, shape index: {}]   ;;  %s1499_s2 = inlined_call_operand.hbm [shape: f32[32,32], index: 2, kind: input, shape index: {}]   ;;  %s1500_s3 = inlined_call_operand.hbm [shape: f32[32,96], index: 3, kind: input, shape index: {}]   ;;  %s1501_s4 = inlined_call_operand.hbm [shape: f32[32,96], index: 4, kind: input, shape index: {}]   ;;  %s1502_s5 = inlined_call_operand.vmem [shape: f32[1,96], index: 5, kind: input, shape index: {}]   ;;  %s1503_s6 = inlined_call_operand.vmem [shape: f32[1,96], index: 6, kind: input, shape index: {}]   ;;  %s1504_s7 = inlined_call_operand.hbm [shape: f32[32,32], index: 7, kind: input, shape index: {}]   ;;  %s1505_s8 = inlined_call_operand.vmem [shape: f32[1,32], index: 8, kind: input, shape index: {}]   ;;  %s1506_s9 = inlined_call_operand.hbm [shape: f32[2,8,32], index: 9, kind: output, shape index: {0}]   ;;  %s1507_s10 = inlined_call_operand.hbm [shape: f32[2,32], index: 10, kind: output, shape index: {1}]  }
   0x1   :  { %17 = vsyncpa [#allocation7], 0 }
   0x2   :  { %18 = vsyncpa [#allocation10], 0 }
   0x3   :  { %19 = vsyncpa [#allocation5], 0 }
   0x4   :  { %20 = vsyncpa [#allocation13], 0  ;;  %s42_s15 = sshll.u32 %s1500_s3, 4  ;;  %s1182_s16 = smov [#allocation6]   ;;  %s43_s15 = int_to_ptr.hbm [resolvable:$true] %s42_s15 }
   0x5   :  { %s44_s17 = sshll.u32 %s1182_s16, 4  ;;  %s29_s20 = sshll.u32 %s1499_s2, 4  ;;  %s45_s17 = int_to_ptr.vmem [resolvable:$true] %s44_s17  ;;  %s30_s20 = int_to_ptr.hbm [resolvable:$true] %s29_s20 }
   0x6   :  { %s1183_s21 = smov 128   ;;  %s1184_s22 = smov 8  }
   0x7   :  { %50 = dma.hbm_to_vmem [thread:$0]  %s43_s15, 512, %s45_s17, [#allocation7], %s1183_s21, %s1183_s21, %s1184_s22  }
   0x8   :  { %s1185_s23 = smov [#allocation3]   ;;  %s55_s3 = sshll.u32 %s1501_s4, 4  ;;  %s56_s3 = int_to_ptr.hbm [resolvable:$true] %s55_s3 }
   0x9   :  { %s31_s24 = sshll.u32 %s1185_s23, 4  ;;  %s72_s28 = sshll.u32 %s1504_s7, 4  ;;  %s32_s24 = int_to_ptr.vmem [resolvable:$true] %s31_s24  ;;  %s73_s28 = int_to_ptr.hbm [resolvable:$true] %s72_s28 }
   0xa   :  { %37 = dma.hbm_to_vmem [thread:$0]  %s30_s20, 512, %s32_s24, [#allocation4], %s1183_s21, %s1183_s21, %s1184_s22  }
   0xb   :  { %s1186_s29 = smov [#allocation8]   ;;  %s1187_s11 = smov [#allocation9]  }
   0xc   :  { %s57_s30 = sshll.u32 %s1186_s29, 4  ;;  %s74_s4 = sshll.u32 %s1187_s11, 4  ;;  %s58_s30 = int_to_ptr.vmem [resolvable:$true] %s57_s30  ;;  %s75_s4 = int_to_ptr.vmem [resolvable:$true] %s74_s4 }
   0xd   :  { %63 = dma.hbm_to_vmem [thread:$0]  %s56_s3, 512, %s58_s30, [#allocation7], %s1183_s21, %s1183_s21, %s1184_s22  }
   0xe   :  { %80 = dma.hbm_to_vmem [thread:$0]  %s73_s28, 512, %s75_s4, [#allocation10], %s1183_s21, %s1183_s21, %s1184_s22  }
   0xf   :  { %1172 = dma.done.wait [#allocation4], 512  }
  0x10   :  { %1173 = vsyncadd [#allocation4], 4294966784 }
  0x11   :  { %1174 = dma.done.wait [#allocation7], 1024  }
  0x12   :  { %1175 = vsyncadd [#allocation7], 4294966272 }
  0x13   :  { %1176 = dma.done.wait [#allocation10], 512  }
  0x14   :  { %1177 = vsyncadd [#allocation10], 4294966784  ;;  %v1188_v0 = vmov 0   ;;  %v99_v1 = vld [vmem:[%s1497_s0] sm:$0xff]  ;;  %v118_v2 = vld [vmem:[#allocation3 + $0x18] sm:$0xff]  ;;  %vm119_vm0 = vcmask 261120   ;;  %v101_v16 = vlaneseq }
  0x15   :  { %976 = vset.pattern.permute.xlu0 %v1188_v0  ;;  %138 = vmatpush.msra.mxu0 %v118_v2  ;;  %v117_v3 = vld [vmem:[#allocation3 + $0x10] sm:$0xff]  ;;  %v116_v4 = vld [vmem:[#allocation3 + $0x8] sm:$0xff]  ;;  %v115_v6 = vld [vmem:[#allocation3] sm:$0xff]  ;;  %v1189_v19 = vmov 0.0   ;;  %s1190_s17 = smov 64   ;;  %s1193_s20 = smov [#allocation12]  }
  0x16   :  { %104 = vperm.xlu0 %976, %v99_v1   ;;  %959 = vmatpush.msra.mxu1 %v118_v2  ;;  %v100_v5 = vld [vmem:[%s1497_s0 + $0x8] sm:$0xff]  ;;  %v1280_v7 = vld [vmem:[#allocation8 + $0x18] sm:$0xff]  ;;  %v1286_v10 = vld [vmem:[#allocation8 + $0x8] sm:$0xff]  ;;  %v102_v17 = vand.u32 127, %v101_v16  ;;  %s916_s23 = sshll.u32 %s1193_s20, 4  ;;  %s918_s26 = sshll.u32 %s1507_s10, 4  ;;  %s917_s23 = int_to_ptr.vmem [resolvable:$true] %s916_s23  ;;  %s919_s26 = int_to_ptr.hbm [resolvable:$true] %s918_s26 }
  0x17   :  { %139 = vmatpush.msra.mxu0 %v117_v3  ;;  %v1282_v8 = vld [vmem:[#allocation8 + $0x10] sm:$0xff]  ;;  %210 = vmatpush.msra.mxu2 %v1280_v7  ;;  %v152_v9 = vld [vmem:[#allocation6 + $0x18] sm:$0xff]  ;;  %v150_v12 = vld [vmem:[#allocation6 + $0x8] sm:$0xff]  ;;  %s1194_s27 = smov [#allocation11]   ;;  %s904_s11 = sshll.u32 %s1506_s9, 4  ;;  %s905_s11 = int_to_ptr.hbm [resolvable:$true] %s904_s11 }
  0x18   :  { %960 = vmatpush.msra.mxu1 %v117_v3  ;;  %289 = vmatpush.msra.mxu3 %v1280_v7  ;;  %v151_v11 = vld [vmem:[#allocation6 + $0x10] sm:$0xff]  ;;  %v1291_v13 = vld [vmem:[#allocation8] sm:$0xff]  ;;  %v1298_v14 = vld [vmem:[%s1498_s1] sm:$0x3]  ;;  %s902_s28 = sshll.u32 %s1194_s27, 4  ;;  %s903_s28 = int_to_ptr.vmem [resolvable:$true] %s902_s28 }
  0x19   :  { %140 = vmatpush.msra.mxu0 %v116_v4  ;;  %211 = vmatpush.msra.mxu2 %v1282_v8  ;;  %v149_v15 = vld [vmem:[#allocation6] sm:$0xff]  ;;  %v1328_v23 = vld [vmem:[%s1503_s6] ss:$0 sm:$0xff]  ;;  %s1192_s6 = smov 32  }
  0x1a   :  { %961 = vmatpush.msra.mxu1 %v116_v4  ;;  %290 = vmatpush.msra.mxu3 %v1282_v8  ;;  %v1337_v28 = vld [vmem:[%s1502_s5] ss:$0 sm:$0xff]  ;;  %s1191_s5 = smov 96  }
  0x1b   :  { %141 = vmatpush.msra.mxu0 %v115_v6  ;;  %212 = vmatpush.msra.mxu2 %v1286_v10 }
  0x1c   :  { %962 = vmatpush.msra.mxu1 %v115_v6  ;;  %291 = vmatpush.msra.mxu3 %v1286_v10 }
  0x1d   :  { %541 = vmatpush.msrb.mxu0 %v1280_v7  ;;  %213 = vmatpush.msra.mxu2 %v1291_v13 }
  0x1e   :  { %107 = vperm.xlu0 %976, %v100_v5   ;;  %175 = vmatpush.msrb.mxu1 %v152_v9 }
  0x1f   :  { %542 = vmatpush.msrb.mxu0 %v1282_v8  ;;  %292 = vmatpush.msra.mxu3 %v1291_v13 }
  0x20   :  { %176 = vmatpush.msrb.mxu1 %v151_v11  ;;  %941 = vmatmul.msk.f32.vlgmr.msra.gmra.mxu2 %vm119_vm0, %v1298_v14 }
  0x21   :  { %543 = vmatpush.msrb.mxu0 %v1286_v10  ;;  %373 = vmatpush.msrb.mxu2 %v1280_v7 }
  0x22   :  { %177 = vmatpush.msrb.mxu1 %v150_v12  ;;  %457 = vmatpush.msrb.mxu3 %v1280_v7 }
  0x23   :  { %544 = vmatpush.msrb.mxu0 %v1291_v13  ;;  %374 = vmatpush.msrb.mxu2 %v1282_v8 }
  0x24   :  { %178 = vmatpush.msrb.mxu1 %v149_v15  ;;  %458 = vmatpush.msrb.mxu3 %v1282_v8 }
  0x25   :  { %375 = vmatpush.msrb.mxu2 %v1286_v10 }
  0x26   :  { %459 = vmatpush.msrb.mxu3 %v1286_v10 }
  0x27   :  { %376 = vmatpush.msrb.mxu2 %v1291_v13 }
  0x28   :  { %460 = vmatpush.msrb.mxu3 %v1291_v13 }
  0x29   :  { %701 = vmatpush.msra.mxu2 %v1280_v7 }
  0x2b   :  { %702 = vmatpush.msra.mxu2 %v1282_v8 }
  0x2d   :  { %703 = vmatpush.msra.mxu2 %v1286_v10 }
  0x2f   :  { %704 = vmatpush.msra.mxu2 %v1291_v13 }
  0x88   :  { %v105_v18 = vpop.permute.xlu0 %104 }
  0x89   :  { %vm109_vm1 = vcmp.eq.s32.totalorder %v105_v18, %v102_v17 }
  0x8a   :  { %v935_v20 = vsel %vm109_vm1, 1.0, %v1189_v19 }
  0x8b   :  { %937 = vmatmul.msk.f32.vlgmr.msra.gmra.mxu0 %vm119_vm0, %v935_v20 }
  0x90   :  { %v108_v21 = vpop.permute.xlu0 %107 }
  0x91   :  { %vm110_vm2 = vcmp.eq.s32.totalorder %v108_v21, %v102_v17 }
  0x92   :  { %v936_v22 = vsel %vm110_vm2, 1.0, %v1189_v19 }
  0x93   :  { %938 = vmatmul.msk.f32.vlgmr.msra.gmra.mxu1 %vm119_vm0, %v936_v22 }
  0x94   :  { %617 = vmatpush.msra.mxu1 %v1280_v7 }
  0x96   :  { %618 = vmatpush.msra.mxu1 %v1282_v8 }
  0x98   :  { %619 = vmatpush.msra.mxu1 %v1286_v10 }
  0x9a   :  { %620 = vmatpush.msra.mxu1 %v1291_v13 }
  0xa3   :  { %v215_v24 = vpop.f32.mrf.mxu2 }
  0xa4   :  { %v216_v25 = vadd.f32 %v1328_v23, %v215_v24 }
  0xa6   :  { %239 = vrot.lane.b32.xlu1 %v216_v25, %s1190_s17 }
 0x108   :  { %v143_v26 = vpop.f32.mrf.mxu0 }
 0x109   :  { %939 = vmatmul.msk.f32.vlgmr.msrb.gmra.mxu1 %vm119_vm0, %v143_v26 }
 0x110   :  { %v146_v27 = vpop.f32.mrf.mxu1 }
 0x111   :  { %940 = vmatmul.msk.f32.gmra.mxu1 %vm119_vm0, %v146_v27 }
 0x118   :  { %v240_v42 = vpop.permute.xlu1 %239 }
 0x186   :  { %v180_v29 = vpop.f32.mrf.mxu1 }
 0x187   :  { %v1340_v30 = vadd.f32 %v1337_v28, %v180_v29 }
 0x189   :  { %v218_v31 = vadd.f32 %v216_v25, %v1340_v30 }
 0x18b   :  { %v942_v32 = vmul.f32 -1.442695, %v218_v31 }
 0x18d   :  { %980 = vpow2.f32 %v942_v32 }
 0x193   :  { %v981_v33 = vpop.eup %980 }
 0x194   :  { %v222_v34 = vadd.f32 1.0, %v981_v33 }
 0x196   :  { %982 = vrcp.f32 %v222_v34  ;;  %v234_v38 = vand.u32 2147483648, %v222_v34  ;;  %v232_v40 = vand.u32 2147483647, %v222_v34  ;;  %vm228_vm4 = vweird.f32 %v222_v34 }
 0x198   :  { %v235_v43 = vor.u32 1.1754944e-38, %v234_v38  ;;  %vm233_vm6 = vcmp.eq.f32.partialorder %v232_v40, 8.507059e+37 }
 0x19c   :  { %v983_v35 = vpop.eup %982 }
 0x19d   :  { %v224_v36 = vmul.f32 %v983_v35, %v222_v34  ;;  %vm229_vm3 = vweird.f32 %v983_v35 }
 0x19e   :  { %vm230_vm5 = vmor %vm228_vm4, %vm229_vm3 }
 0x19f   :  { %v225_v37 = vsub.f32 1.0, %v224_v36 }
 0x1a1   :  { %v226_v39 = vmul.f32 %v983_v35, %v225_v37 }
 0x1a3   :  { %v227_v41 = vadd.f32 %v983_v35, %v226_v39 }
 0x1a5   :  { %v231_v44 = vsel %vm230_vm5, %v983_v35, %v227_v41 }
 0x1a6   :  { %v236_v45 = vsel %vm233_vm6, %v235_v43, %v231_v44 }
 0x1a7   :  { %v242_v46 = vmul.f32 %v240_v42, %v236_v45  ;;  %v249_v51 = vsub.f32 1.0, %v236_v45 }
 0x1a9   :  { %244 = vrot.lane.b32.xlu1 %v242_v46, %s1190_s17 }
 0x21b   :  { %v245_v47 = vpop.permute.xlu1 %244 }
 0x21c   :  { %v247_v48 = vadd.f32 %v245_v47, %v1340_v30 }
 0x21e   :  { %984 = vtanh.f32 %v247_v48 }
 0x224   :  { %v985_v49 = vpop.eup %984 }
 0x225   :  { %251 = vrot.lane.b32.xlu2 %v985_v49, %s1191_s5 }
 0x22d   :  { %255 = vrot.lane.b32.xlu2 %v1298_v14, %s1192_s6 }
 0x27f   :  { %v252_v50 = vpop.permute.xlu2 %251 }
 0x280   :  { %v254_v53 = vmul.f32 %v252_v50, %v249_v51 }
 0x287   :  { %v256_v52 = vpop.permute.xlu2 %255 }
 0x288   :  { %v258_v54 = vmul.f32 %v256_v52, %v236_v45 }
 0x28a   :  { %v1347_v55 = vadd.f32 %v258_v54, %v254_v53 }
 0x28c   :  { %273 = vrot.lane.b32.xlu0 %v1347_v55, %s1191_s5  ;;  %v336_v16 = vrot.slane %v1347_v55, 6 }
 0x2fe   :  { %v274_v56 = vpop.permute.xlu0 %273 }
 0x2ff   :  { %943 = vmatmul.msk.f32.vlgmr.msra.gmra.mxu3 %vm119_vm0, %v274_v56 }
 0x300   :  { %785 = vmatpush.msra.mxu3 %v1280_v7 }
 0x302   :  { %786 = vmatpush.msra.mxu3 %v1282_v8 }
 0x304   :  { %787 = vmatpush.msra.mxu3 %v1286_v10 }
 0x306   :  { %788 = vmatpush.msra.mxu3 %v1291_v13 }
 0x382   :  { %v294_v57 = vpop.f32.mrf.mxu3 }
 0x383   :  { %v295_v58 = vadd.f32 %v1328_v23, %v294_v57 }
 0x385   :  { %v298_v59 = vrot.slane %v295_v58, 6 }
 0x387   :  { %320 = vrot.lane.b32.xlu1 %v298_v59, %s1190_s17  ;;  %v300_v60 = vadd.f32 %v298_v59, %v1340_v30 }
 0x389   :  { %v944_v61 = vmul.f32 -1.442695, %v300_v60 }
 0x38b   :  { %986 = vpow2.f32 %v944_v61 }
 0x391   :  { %v987_v62 = vpop.eup %986 }
 0x392   :  { %v304_v63 = vadd.f32 1.0, %v987_v62 }
 0x394   :  { %988 = vrcp.f32 %v304_v63  ;;  %v316_v5 = vand.u32 2147483648, %v304_v63  ;;  %vm310_vm8 = vweird.f32 %v304_v63  ;;  %v314_v6 = vand.u32 2147483647, %v304_v63 }
 0x396   :  { %v317_v8 = vor.u32 1.1754944e-38, %v316_v5  ;;  %vm315_vm10 = vcmp.eq.f32.partialorder %v314_v6, 8.507059e+37 }
 0x39a   :  { %v989_v0 = vpop.eup %988 }
 0x39b   :  { %v306_v1 = vmul.f32 %v989_v0, %v304_v63  ;;  %vm311_vm7 = vweird.f32 %v989_v0 }
 0x39c   :  { %vm312_vm9 = vmor %vm310_vm8, %vm311_vm7 }
 0x39d   :  { %v307_v2 = vsub.f32 1.0, %v306_v1 }
 0x39f   :  { %v308_v3 = vmul.f32 %v989_v0, %v307_v2 }
 0x3a1   :  { %v309_v4 = vadd.f32 %v989_v0, %v308_v3 }
 0x3a3   :  { %v313_v7 = vsel %vm312_vm9, %v989_v0, %v309_v4 }
 0x3a4   :  { %v318_v10 = vsel %vm315_vm10, %v317_v8, %v313_v7 }
 0x3a5   :  { %v330_v15 = vsub.f32 1.0, %v318_v10  ;;  %v338_v19 = vmul.f32 %v336_v16, %v318_v10 }
 0x3f9   :  { %v321_v9 = vpop.permute.xlu1 %320 }
 0x3fa   :  { %v323_v11 = vmul.f32 %v321_v9, %v318_v10 }
 0x3fc   :  { %325 = vrot.lane.b32.xlu2 %v323_v11, %s1190_s17 }
 0x456   :  { %v326_v12 = vpop.permute.xlu2 %325 }
 0x457   :  { %v328_v13 = vadd.f32 %v326_v12, %v1340_v30 }
 0x459   :  { %990 = vtanh.f32 %v328_v13 }
 0x45f   :  { %v991_v14 = vpop.eup %990 }
 0x460   :  { %332 = vrot.lane.b32.xlu0 %v991_v14, %s1191_s5 }
 0x4d2   :  { %v333_v17 = vpop.permute.xlu0 %332 }
 0x4d3   :  { %v335_v18 = vmul.f32 %v333_v17, %v330_v15 }
 0x4d5   :  { %v339_v20 = vadd.f32 %v338_v19, %v335_v18 }
 0x4d7   :  { %341 = vst [vmem:[#allocation1] sm:$0xff] %v339_v20  ;;  %v356_v21 = vrot.slane %v339_v20, 2  ;;  %v420_v42 = vrot.slane %v339_v20, 6 }
 0x4d9   :  { %357 = vrot.lane.b32.xlu1 %v356_v21, %s1191_s5 }
 0x4de   :  { %v1371_v54 = vld [vmem:[#allocation1 + $0x2] ss:$9 sm:$0xff] }
 0x4df   :  { %v1373_v56 = vld [vmem:[#allocation1 + $0x3] ss:$9 sm:$0xff] }
 0x54b   :  { %v358_v22 = vpop.permute.xlu1 %357 }
 0x54c   :  { %945 = vmatmul.msk.f32.vlgmr.msrb.gmra.mxu2 %vm119_vm0, %v358_v22 }
 0x5cf   :  { %v378_v24 = vpop.f32.mrf.mxu2 }
 0x5d0   :  { %v379_v25 = vadd.f32 %v1328_v23, %v378_v24 }
 0x5d2   :  { %v382_v26 = vrot.slane %v379_v25, 4 }
 0x5d4   :  { %v384_v27 = vadd.f32 %v382_v26, %v1340_v30  ;;  %404 = vrot.lane.b32.xlu2 %v382_v26, %s1190_s17 }
 0x5d6   :  { %v946_v29 = vmul.f32 -1.442695, %v384_v27 }
 0x5d8   :  { %992 = vpow2.f32 %v946_v29 }
 0x5de   :  { %v993_v31 = vpop.eup %992 }
 0x5df   :  { %v388_v32 = vadd.f32 1.0, %v993_v31  ;;  %v183_v31 = vpop.f32.mrf.mxu1 }
 0x5e1   :  { %994 = vrcp.f32 %v388_v32  ;;  %v400_v36 = vand.u32 2147483648, %v388_v32  ;;  %v398_v38 = vand.u32 2147483647, %v388_v32  ;;  %vm394_vm12 = vweird.f32 %v388_v32 }
 0x5e3   :  { %v401_v40 = vor.u32 1.1754944e-38, %v400_v36  ;;  %vm399_vm14 = vcmp.eq.f32.partialorder %v398_v38, 8.507059e+37 }
 0x5e7   :  { %v995_v33 = vpop.eup %994 }
 0x5e8   :  { %v390_v34 = vmul.f32 %v995_v33, %v388_v32  ;;  %vm395_vm11 = vweird.f32 %v995_v33  ;;  %v1392_v32 = vadd.f32 %v1337_v28, %v183_v31 }
 0x5e9   :  { %vm396_vm13 = vmor %vm394_vm12, %vm395_vm11 }
 0x5ea   :  { %v391_v35 = vsub.f32 1.0, %v390_v34 }
 0x5ec   :  { %v392_v37 = vmul.f32 %v995_v33, %v391_v35 }
 0x5ee   :  { %v393_v39 = vadd.f32 %v995_v33, %v392_v37 }
 0x5f0   :  { %v397_v41 = vsel %vm396_vm13, %v995_v33, %v393_v39 }
 0x5f1   :  { %v402_v43 = vsel %vm399_vm14, %v401_v40, %v397_v41 }
 0x5f2   :  { %v422_v44 = vmul.f32 %v420_v42, %v402_v43  ;;  %v414_v50 = vsub.f32 1.0, %v402_v43 }
 0x62e   :  { %v405_v45 = vpop.permute.xlu2 %404 }
 0x62f   :  { %v407_v46 = vmul.f32 %v405_v45, %v402_v43 }
 0x631   :  { %409 = vrot.lane.b32.xlu0 %v407_v46, %s1190_s17 }
 0x6a3   :  { %v410_v47 = vpop.permute.xlu0 %409 }
 0x6a4   :  { %v412_v48 = vadd.f32 %v410_v47, %v1340_v30 }
 0x6a6   :  { %996 = vtanh.f32 %v412_v48 }
 0x6ac   :  { %v997_v49 = vpop.eup %996 }
 0x6ad   :  { %416 = vrot.lane.b32.xlu1 %v997_v49, %s1191_s5 }
 0x71f   :  { %v417_v51 = vpop.permute.xlu1 %416 }
 0x720   :  { %v419_v52 = vmul.f32 %v417_v51, %v414_v50 }
 0x722   :  { %v423_v53 = vadd.f32 %v422_v44, %v419_v52 }
 0x724   :  { %425 = vst [vmem:[#allocation1] sm:$0xff] %v423_v53  ;;  %v440_v57 = vrot.slane %v423_v53, 4  ;;  %v504_v18 = vrot.slane %v423_v53, 6 }
 0x726   :  { %441 = vrot.lane.b32.xlu2 %v440_v57, %s1191_s5 }
 0x72b   :  { %v1383_v24 = vld [vmem:[#allocation1 + $0x4] ss:$9 sm:$0xff] }
 0x72c   :  { %v1385_v25 = vld [vmem:[#allocation1 + $0x5] ss:$9 sm:$0xff] }
 0x780   :  { %v442_v58 = vpop.permute.xlu2 %441 }
 0x781   :  { %947 = vmatmul.msk.f32.vlgmr.msrb.gmra.mxu3 %vm119_vm0, %v442_v58 }
 0x804   :  { %v462_v59 = vpop.f32.mrf.mxu3 }
 0x805   :  { %v463_v60 = vadd.f32 %v1328_v23, %v462_v59 }
 0x807   :  { %v466_v61 = vrot.slane %v463_v60, 2 }
 0x809   :  { %488 = vrot.lane.b32.xlu0 %v466_v61, %s1190_s17  ;;  %v468_v62 = vadd.f32 %v466_v61, %v1340_v30 }
 0x80b   :  { %v948_v63 = vmul.f32 -1.442695, %v468_v62 }
 0x80d   :  { %998 = vpow2.f32 %v948_v63 }
 0x813   :  { %v999_v0 = vpop.eup %998 }
 0x814   :  { %v472_v1 = vadd.f32 1.0, %v999_v0 }
 0x816   :  { %1000 = vrcp.f32 %v472_v1  ;;  %v484_v7 = vand.u32 2147483648, %v472_v1  ;;  %vm478_vm1 = vweird.f32 %v472_v1  ;;  %v482_v8 = vand.u32 2147483647, %v472_v1 }
 0x818   :  { %v485_v10 = vor.u32 1.1754944e-38, %v484_v7  ;;  %vm483_vm3 = vcmp.eq.f32.partialorder %v482_v8, 8.507059e+37 }
 0x81c   :  { %v1001_v2 = vpop.eup %1000 }
 0x81d   :  { %v474_v3 = vmul.f32 %v1001_v2, %v472_v1  ;;  %vm479_vm15 = vweird.f32 %v1001_v2 }
 0x81e   :  { %vm480_vm2 = vmor %vm478_vm1, %vm479_vm15 }
 0x81f   :  { %v475_v4 = vsub.f32 1.0, %v474_v3 }
 0x821   :  { %v476_v5 = vmul.f32 %v1001_v2, %v475_v4 }
 0x823   :  { %v477_v6 = vadd.f32 %v1001_v2, %v476_v5 }
 0x825   :  { %v481_v9 = vsel %vm480_vm2, %v1001_v2, %v477_v6 }
 0x826   :  { %v486_v12 = vsel %vm483_vm3, %v485_v10, %v481_v9 }
 0x827   :  { %v498_v17 = vsub.f32 1.0, %v486_v12  ;;  %v506_v20 = vmul.f32 %v504_v18, %v486_v12 }
 0x87b   :  { %v489_v11 = vpop.permute.xlu0 %488 }
 0x87c   :  { %v491_v13 = vmul.f32 %v489_v11, %v486_v12 }
 0x87e   :  { %493 = vrot.lane.b32.xlu1 %v491_v13, %s1190_s17 }
 0x8f0   :  { %v494_v14 = vpop.permute.xlu1 %493 }
 0x8f1   :  { %v496_v15 = vadd.f32 %v494_v14, %v1340_v30 }
 0x8f3   :  { %1002 = vtanh.f32 %v496_v15 }
 0x8f9   :  { %v1003_v16 = vpop.eup %1002 }
 0x8fa   :  { %500 = vrot.lane.b32.xlu2 %v1003_v16, %s1191_s5 }
 0x954   :  { %v501_v19 = vpop.permute.xlu2 %500 }
 0x955   :  { %v503_v21 = vmul.f32 %v501_v19, %v498_v17 }
 0x957   :  { %v507_v22 = vadd.f32 %v506_v20, %v503_v21 }
 0x959   :  { %509 = vst [vmem:[#allocation1] sm:$0xff] %v507_v22  ;;  %v524_v26 = vrot.slane %v507_v22, 6 }
 0x95b   :  { %525 = vrot.lane.b32.xlu0 %v524_v26, %s1191_s5 }
 0x9cd   :  { %v526_v27 = vpop.permute.xlu0 %525 }
 0x9ce   :  { %949 = vmatmul.msk.f32.vlgmr.msrb.gmra.mxu0 %vm119_vm0, %v526_v27  ;;  %v511_v27 = vld [vmem:[#allocation1 + $0x6] ss:$9 sm:$0xff] }
 0xa4b   :  { %v546_v30 = vpop.f32.mrf.mxu0 }
 0xa4c   :  { %v547_v29 = vadd.f32 %v1328_v23, %v546_v30  ;;  %v1410_v30 = vld [vmem:[#allocation1 + $0x7] ss:$9 sm:$0xff] }
 0xa4e   :  { %570 = vrot.lane.b32.xlu1 %v547_v29, %s1190_s17  ;;  %v549_v33 = vadd.f32 %v547_v29, %v1392_v32 }
 0xa50   :  { %v950_v34 = vmul.f32 -1.442695, %v549_v33 }
 0xa52   :  { %1004 = vpow2.f32 %v950_v34 }
 0xa58   :  { %v1005_v35 = vpop.eup %1004 }
 0xa59   :  { %v553_v36 = vadd.f32 1.0, %v1005_v35 }
 0xa5b   :  { %1006 = vrcp.f32 %v553_v36  ;;  %v565_v42 = vand.u32 2147483648, %v553_v36  ;;  %vm559_vm5 = vweird.f32 %v553_v36  ;;  %v563_v43 = vand.u32 2147483647, %v553_v36 }
 0xa5d   :  { %v566_v28 = vor.u32 1.1754944e-38, %v565_v42  ;;  %vm564_vm7 = vcmp.eq.f32.partialorder %v563_v43, 8.507059e+37 }
 0xa61   :  { %v1007_v37 = vpop.eup %1006 }
 0xa62   :  { %v555_v38 = vmul.f32 %v1007_v37, %v553_v36  ;;  %vm560_vm4 = vweird.f32 %v1007_v37 }
 0xa63   :  { %vm561_vm6 = vmor %vm559_vm5, %vm560_vm4  ;;  %vm270_vm5 = vcmask 253952  }
 0xa64   :  { %v556_v39 = vsub.f32 1.0, %v555_v38 }
 0xa66   :  { %v557_v40 = vmul.f32 %v1007_v37, %v556_v39 }
 0xa68   :  { %v558_v41 = vadd.f32 %v1007_v37, %v557_v40 }
 0xa6a   :  { %v562_v44 = vsel %vm561_vm6, %v1007_v37, %v558_v41  ;;  %vm855_vm6 = vcmask 261126  }
 0xa6b   :  { %v567_v46 = vsel %vm564_vm7, %v566_v28, %v562_v44 }
 0xa6c   :  { %v580_v51 = vsub.f32 1.0, %v567_v46  ;;  %v587_v53 = vmul.f32 %v567_v46, %v524_v26 }
 0xac0   :  { %v571_v45 = vpop.permute.xlu1 %570 }
 0xac1   :  { %v573_v47 = vmul.f32 %v571_v45, %v567_v46 }
 0xac3   :  { %575 = vrot.lane.b32.xlu2 %v573_v47, %s1190_s17 }
 0xb1d   :  { %v576_v48 = vpop.permute.xlu2 %575 }
 0xb1e   :  { %v578_v49 = vadd.f32 %v576_v48, %v1392_v32 }
 0xb20   :  { %1008 = vtanh.f32 %v578_v49 }
 0xb26   :  { %v1009_v50 = vpop.eup %1008 }
 0xb27   :  { %582 = vrot.lane.b32.xlu0 %v1009_v50, %s1191_s5 }
 0xb99   :  { %v583_v52 = vpop.permute.xlu0 %582 }
 0xb9a   :  { %v585_v57 = vmul.f32 %v583_v52, %v580_v51 }
 0xb9c   :  { %v1398_v58 = vadd.f32 %v587_v53, %v585_v57 }
 0xb9e   :  { %601 = vrot.lane.b32.xlu1 %v1398_v58, %s1191_s5  ;;  %v664_v12 = vrot.slane %v1398_v58, 6 }
 0xc10   :  { %v602_v59 = vpop.permute.xlu1 %601 }
 0xc11   :  { %951 = vmatmul.msk.f32.vlgmr.msra.gmra.mxu1 %vm119_vm0, %v602_v59 }
 0xc8e   :  { %v622_v60 = vpop.f32.mrf.mxu1 }
 0xc8f   :  { %v623_v61 = vadd.f32 %v1328_v23, %v622_v60 }
 0xc91   :  { %v626_v62 = vrot.slane %v623_v61, 6 }
 0xc93   :  { %v628_v63 = vadd.f32 %v626_v62, %v1392_v32  ;;  %648 = vrot.lane.b32.xlu2 %v626_v62, %s1190_s17 }
 0xc95   :  { %v952_v0 = vmul.f32 -1.442695, %v628_v63 }
 0xc97   :  { %1010 = vpow2.f32 %v952_v0 }
 0xc9d   :  { %v1011_v1 = vpop.eup %1010 }
 0xc9e   :  { %v632_v2 = vadd.f32 1.0, %v1011_v1 }
 0xca0   :  { %1012 = vrcp.f32 %v632_v2  ;;  %v644_v6 = vand.u32 2147483648, %v632_v2  ;;  %v642_v8 = vand.u32 2147483647, %v632_v2  ;;  %vm638_vm9 = vweird.f32 %v632_v2 }
 0xca2   :  { %v645_v10 = vor.u32 1.1754944e-38, %v644_v6  ;;  %vm643_vm11 = vcmp.eq.f32.partialorder %v642_v8, 8.507059e+37  ;;  %v514_v8 = vperm.slane %v511_v27, 0 }
 0xca6   :  { %v1013_v3 = vpop.eup %1012 }
 0xca7   :  { %v634_v4 = vmul.f32 %v1013_v3, %v632_v2  ;;  %vm639_vm8 = vweird.f32 %v1013_v3 }
 0xca8   :  { %vm640_vm10 = vmor %vm638_vm9, %vm639_vm8 }
 0xca9   :  { %v635_v5 = vsub.f32 1.0, %v634_v4 }
 0xcab   :  { %v636_v7 = vmul.f32 %v1013_v3, %v635_v5 }
 0xcad   :  { %v637_v9 = vadd.f32 %v1013_v3, %v636_v7  ;;  %v262_v7 = vperm.slane %v1347_v55, 0 }
 0xcaf   :  { %v641_v11 = vsel %vm640_vm10, %v1013_v3, %v637_v9 }
 0xcb0   :  { %v646_v13 = vsel %vm643_vm11, %v645_v10, %v641_v11  ;;  %v347_v11 = vperm.slane %v1373_v56, 0 }
 0xcb1   :  { %v666_v14 = vmul.f32 %v664_v12, %v646_v13  ;;  %v658_v20 = vsub.f32 1.0, %v646_v13 }
 0xced   :  { %v649_v15 = vpop.permute.xlu2 %648 }
 0xcee   :  { %v651_v16 = vmul.f32 %v649_v15, %v646_v13 }
 0xcf0   :  { %653 = vrot.lane.b32.xlu0 %v651_v16, %s1190_s17 }
 0xd62   :  { %v654_v17 = vpop.permute.xlu0 %653 }
 0xd63   :  { %v656_v18 = vadd.f32 %v654_v17, %v1392_v32 }
 0xd65   :  { %1014 = vtanh.f32 %v656_v18 }
 0xd6b   :  { %v1015_v19 = vpop.eup %1014 }
 0xd6c   :  { %660 = vrot.lane.b32.xlu1 %v1015_v19, %s1191_s5 }
 0xdde   :  { %v661_v21 = vpop.permute.xlu1 %660 }
 0xddf   :  { %v663_v22 = vmul.f32 %v661_v21, %v658_v20 }
 0xde1   :  { %v667_v26 = vadd.f32 %v666_v14, %v663_v22 }
 0xde3   :  { %v684_v29 = vrot.slane %v667_v26, 2  ;;  %669 = vst [vmem:[#allocation1] sm:$0xff] %v667_v26  ;;  %v748_v59 = vrot.slane %v667_v26, 6 }
 0xde5   :  { %685 = vrot.lane.b32.xlu2 %v684_v29, %s1191_s5 }
 0xdea   :  { %v1422_v0 = vld [vmem:[#allocation1 + $0x2] ss:$9 sm:$0xff] }
 0xdeb   :  { %v1424_v1 = vld [vmem:[#allocation1 + $0x3] ss:$9 sm:$0xff] }
 0xe3f   :  { %v686_v31 = vpop.permute.xlu2 %685 }
 0xe40   :  { %953 = vmatmul.msk.f32.vlgmr.msra.gmra.mxu2 %vm119_vm0, %v686_v31 }
 0xec3   :  { %v706_v33 = vpop.f32.mrf.mxu2 }
 0xec4   :  { %v707_v34 = vadd.f32 %v1328_v23, %v706_v33 }
 0xec6   :  { %v710_v35 = vrot.slane %v707_v34, 4 }
 0xec8   :  { %732 = vrot.lane.b32.xlu0 %v710_v35, %s1190_s17  ;;  %v712_v36 = vadd.f32 %v710_v35, %v1392_v32  ;;  %v346_v35 = vperm.slane %v1371_v54, 0 }
 0xeca   :  { %v954_v37 = vmul.f32 -1.442695, %v712_v36 }
 0xecc   :  { %1016 = vpow2.f32 %v954_v37  ;;  %v591_v37 = vperm.slane %v1398_v58, 0 }
 0xed2   :  { %v1017_v38 = vpop.eup %1016 }
 0xed3   :  { %v716_v39 = vadd.f32 1.0, %v1017_v38 }
 0xed5   :  { %1018 = vrcp.f32 %v716_v39  ;;  %v728_v28 = vand.u32 2147483648, %v716_v39  ;;  %vm722_vm13 = vweird.f32 %v716_v39  ;;  %v726_v45 = vand.u32 2147483647, %v716_v39 }
 0xed7   :  { %v729_v47 = vor.u32 1.1754944e-38, %v728_v28  ;;  %vm727_vm15 = vcmp.eq.f32.partialorder %v726_v45, 8.507059e+37  ;;  %v674_v45 = vperm.slane %v1422_v0, 0 }
 0xedb   :  { %v1019_v40 = vpop.eup %1018 }
 0xedc   :  { %v718_v41 = vmul.f32 %v1019_v40, %v716_v39  ;;  %vm723_vm12 = vweird.f32 %v1019_v40  ;;  %v431_v39 = vperm.slane %v1385_v25, 0  ;;  %v430_v25 = vperm.slane %v1383_v24, 0 }
 0xedd   :  { %vm724_vm14 = vmor %vm722_vm13, %vm723_vm12 }
 0xede   :  { %v719_v42 = vsub.f32 1.0, %v718_v41 }
 0xee0   :  { %v720_v43 = vmul.f32 %v1019_v40, %v719_v42 }
 0xee2   :  { %v721_v44 = vadd.f32 %v1019_v40, %v720_v43 }
 0xee4   :  { %v725_v46 = vsel %vm724_vm14, %v1019_v40, %v721_v44 }
 0xee5   :  { %v730_v49 = vsel %vm727_vm15, %v729_v47, %v725_v46  ;;  %v515_v47 = vperm.slane %v1410_v30, 0 }
 0xee6   :  { %v742_v57 = vsub.f32 1.0, %v730_v49  ;;  %v750_v61 = vmul.f32 %v748_v59, %v730_v49 }
 0xf3a   :  { %v733_v48 = vpop.permute.xlu0 %732 }
 0xf3b   :  { %v735_v50 = vmul.f32 %v733_v48, %v730_v49 }
 0xf3d   :  { %737 = vrot.lane.b32.xlu1 %v735_v50, %s1190_s17 }
 0xfaf   :  { %v738_v51 = vpop.permute.xlu1 %737 }
 0xfb0   :  { %v740_v52 = vadd.f32 %v738_v51, %v1392_v32 }
 0xfb2   :  { %1020 = vtanh.f32 %v740_v52 }
 0xfb8   :  { %v1021_v53 = vpop.eup %1020 }
 0xfb9   :  { %744 = vrot.lane.b32.xlu2 %v1021_v53, %s1191_s5 }
0x1013   :  { %v745_v60 = vpop.permute.xlu2 %744 }
0x1014   :  { %v747_v62 = vmul.f32 %v745_v60, %v742_v57 }
0x1016   :  { %v1420_v63 = vadd.f32 %v750_v61, %v747_v62 }
0x1018   :  { %v768_v2 = vrot.slane %v1420_v63, 4  ;;  %753 = vst [vmem:[#allocation1] sm:$0xff] %v1420_v63  ;;  %v832_v50 = vrot.slane %v1420_v63, 6  ;;  %v675_v63 = vperm.slane %v1424_v1, 0 }
0x101a   :  { %769 = vrot.lane.b32.xlu0 %v768_v2, %s1191_s5 }
0x101f   :  { %v755_v9 = vld [vmem:[#allocation1 + $0x4] ss:$9 sm:$0xff] }
0x1020   :  { %v758_v10 = vperm.slane %v755_v9, 0  ;;  %v757_v24 = vld [vmem:[#allocation1 + $0x5] ss:$9 sm:$0xff] }
0x1021   :  { %v759_v48 = vperm.slane %v757_v24, 0 }
0x108c   :  { %v770_v3 = vpop.permute.xlu0 %769 }
0x108d   :  { %955 = vmatmul.msk.f32.vlgmr.msra.gmra.mxu3 %vm119_vm0, %v770_v3 }
0x1110   :  { %v790_v4 = vpop.f32.mrf.mxu3 }
0x1111   :  { %v791_v5 = vadd.f32 %v1328_v23, %v790_v4  ;;  %v590_v23 = vrot.slane %v1398_v58, 1  ;;  %v862_v4 = vld [vmem:[#allocation9 + $0x18] sm:$0xff] }
0x1112   :  { %885 = vmatpush.msra.mxu0 %v862_v4 }
0x1113   :  { %v794_v6 = vrot.slane %v791_v5, 2  ;;  %v592_v12 = vperm.slane %v590_v23, 0  ;;  %v861_v5 = vld [vmem:[#allocation9 + $0x10] sm:$0xff] }
0x1114   :  { %886 = vmatpush.msra.mxu0 %v861_v5 }
0x1115   :  { %816 = vrot.lane.b32.xlu1 %v794_v6, %s1190_s17  ;;  %v796_v13 = vadd.f32 %v794_v6, %v1392_v32  ;;  %v860_v6 = vld [vmem:[#allocation9 + $0x8] sm:$0xff] }
0x1116   :  { %887 = vmatpush.msra.mxu0 %v860_v6 }
0x1117   :  { %v956_v14 = vmul.f32 -1.442695, %v796_v13 }
0x1119   :  { %1022 = vpow2.f32 %v956_v14 }
0x111d   :  { %264 = vrot.lane.b32.xlu1 %v262_v7, %s1191_s5  ;;  %v859_v7 = vld [vmem:[#allocation9] sm:$0xff] }
0x111e   :  { %888 = vmatpush.msra.mxu0 %v859_v7 }
0x111f   :  { %v1023_v15 = vpop.eup %1022 }
0x1120   :  { %v800_v16 = vadd.f32 1.0, %v1023_v15 }
0x1122   :  { %1024 = vrcp.f32 %v800_v16  ;;  %v812_v56 = vand.u32 2147483648, %v800_v16  ;;  %vm806_vm2 = vweird.f32 %v800_v16  ;;  %v810_v22 = vand.u32 2147483647, %v800_v16 }
0x1124   :  { %v813_v27 = vor.u32 1.1754944e-38, %v812_v56  ;;  %vm811_vm4 = vcmp.eq.f32.partialorder %v810_v22, 8.507059e+37 }
0x1125   :  { %516 = vrot.lane.b32.xlu1 %v514_v8, %s1191_s5 }
0x1128   :  { %v1025_v17 = vpop.eup %1024 }
0x1129   :  { %v802_v18 = vmul.f32 %v1025_v17, %v800_v16  ;;  %vm807_vm1 = vweird.f32 %v1025_v17 }
0x112a   :  { %vm808_vm3 = vmor %vm806_vm2, %vm807_vm1 }
0x112b   :  { %v803_v19 = vsub.f32 1.0, %v802_v18 }
0x112d   :  { %760 = vrot.lane.b32.xlu1 %v758_v10, %s1191_s5  ;;  %v804_v20 = vmul.f32 %v1025_v17, %v803_v19 }
0x112f   :  { %v805_v21 = vadd.f32 %v1025_v17, %v804_v20 }
0x1131   :  { %v809_v26 = vsel %vm808_vm3, %v1025_v17, %v805_v21 }
0x1132   :  { %v814_v31 = vsel %vm811_vm4, %v813_v27, %v809_v26 }
0x1133   :  { %v826_v49 = vsub.f32 1.0, %v814_v31  ;;  %v834_v52 = vmul.f32 %v832_v50, %v814_v31 }
0x1135   :  { %350 = vrot.lane.b32.xlu1 %v347_v11, %s1191_s5 }
0x113d   :  { %595 = vrot.lane.b32.xlu1 %v592_v12, %s1191_s5  ;;  %v979_v12 = vld [vmem:[%s1505_s8] ss:$0 sm:$0xff] }
0x1187   :  { %v817_v29 = vpop.permute.xlu1 %816 }
0x1188   :  { %v819_v33 = vmul.f32 %v817_v29, %v814_v31 }
0x118a   :  { %821 = vrot.lane.b32.xlu2 %v819_v33, %s1190_s17 }
0x118f   :  { %v265_v34 = vpop.permute.xlu1 %264 }
0x1190   :  { %271 = vst.msk [vmem:[#allocation2] sm:$0x1] %vm270_vm5, %v265_v34 }
0x1192   :  { %348 = vrot.lane.b32.xlu2 %v346_v35, %s1191_s5 }
0x1197   :  { %v517_v36 = vpop.permute.xlu1 %516 }
0x1198   :  { %522 = vst.msk [vmem:[#allocation2 + $0x3] sm:$0x1] %vm270_vm5, %v517_v36 }
0x119a   :  { %593 = vrot.lane.b32.xlu2 %v591_v37, %s1191_s5 }
0x119f   :  { %v761_v38 = vpop.permute.xlu1 %760 }
0x11a0   :  { %766 = vst.msk [vmem:[#allocation2 + $0x6] sm:$0x1] %vm270_vm5, %v761_v38 }
0x11a2   :  { %434 = vrot.lane.b32.xlu2 %v431_v39, %s1191_s5 }
0x11a7   :  { %v351_v40 = vpop.permute.xlu1 %350 }
0x11a8   :  { %355 = vst.msk [vmem:[#allocation2 + $0x9] sm:$0x1] %vm270_vm5, %v351_v40 }
0x11af   :  { %v596_v54 = vpop.permute.xlu1 %595 }
0x11b0   :  { %600 = vst.msk [vmem:[#allocation2 + $0xc] sm:$0x1] %vm270_vm5, %v596_v54 }
0x11e4   :  { %v822_v41 = vpop.permute.xlu2 %821 }
0x11e5   :  { %v824_v42 = vadd.f32 %v822_v41, %v1392_v32  ;;  %v261_v32 = vrot.slane %v1347_v55, 1 }
0x11e7   :  { %1026 = vtanh.f32 %v824_v42  ;;  %v263_v46 = vperm.slane %v261_v32, 0 }
0x11ec   :  { %v349_v58 = vpop.permute.xlu2 %348 }
0x11ed   :  { %v1027_v43 = vpop.eup %1026  ;;  %354 = vst.msk [vmem:[#allocation2 + $0x1] sm:$0x1] %vm270_vm5, %v349_v58 }
0x11ee   :  { %828 = vrot.lane.b32.xlu0 %v1027_v43, %s1191_s5 }
0x11f4   :  { %v594_v44 = vpop.permute.xlu2 %593 }
0x11f5   :  { %599 = vst.msk [vmem:[#allocation2 + $0x4] sm:$0x1] %vm270_vm5, %v594_v44 }
0x11f6   :  { %432 = vrot.lane.b32.xlu0 %v430_v25, %s1191_s5 }
0x11fc   :  { %v435_v28 = vpop.permute.xlu2 %434 }
0x11fd   :  { %439 = vst.msk [vmem:[#allocation2 + $0xa] sm:$0x1] %vm270_vm5, %v435_v28 }
0x11fe   :  { %676 = vrot.lane.b32.xlu0 %v674_v45, %s1191_s5 }
0x1206   :  { %266 = vrot.lane.b32.xlu0 %v263_v46, %s1191_s5 }
0x120e   :  { %518 = vrot.lane.b32.xlu0 %v515_v47, %s1191_s5 }
0x1216   :  { %762 = vrot.lane.b32.xlu0 %v759_v48, %s1191_s5 }
0x1260   :  { %v829_v51 = vpop.permute.xlu0 %828 }
0x1261   :  { %v831_v53 = vmul.f32 %v829_v51, %v826_v49 }
0x1263   :  { %v835_v57 = vadd.f32 %v834_v52, %v831_v53 }
0x1265   :  { %837 = vst [vmem:[#allocation1] sm:$0xff] %v835_v57 }
0x1268   :  { %v433_v55 = vpop.permute.xlu0 %432 }
0x1269   :  { %438 = vst.msk [vmem:[#allocation2 + $0x2] sm:$0x1] %vm270_vm5, %v433_v55 }
0x126c   :  { %v839_v59 = vld [vmem:[#allocation1 + $0x6] ss:$9 sm:$0xff] }
0x126d   :  { %v841_v60 = vld [vmem:[#allocation1 + $0x7] ss:$9 sm:$0xff]  ;;  %v842_v30 = vperm.slane %v839_v59, 0 }
0x126e   :  { %v843_v61 = vperm.slane %v841_v60, 0 }
0x126f   :  { %844 = vrot.lane.b32.xlu2 %v842_v30, %s1191_s5 }
0x1270   :  { %846 = vrot.lane.b32.xlu1 %v843_v61, %s1191_s5  ;;  %v677_v62 = vpop.permute.xlu0 %676 }
0x1271   :  { %682 = vst.msk [vmem:[#allocation2 + $0x5] sm:$0x1] %vm270_vm5, %v677_v62 }
0x1277   :  { %678 = vrot.lane.b32.xlu2 %v675_v63, %s1191_s5 }
0x1278   :  { %v267_v0 = vpop.permute.xlu0 %266 }
0x1279   :  { %272 = vst.msk [vmem:[#allocation2 + $0x8] sm:$0x1] %vm270_vm5, %v267_v0 }
0x127f   :  { %852 = vrot.lane.b32.xlu2 %v835_v57, %s1191_s5 }
0x1280   :  { %v519_v2 = vpop.permute.xlu0 %518 }
0x1281   :  { %523 = vst.msk [vmem:[#allocation2 + $0xb] sm:$0x1] %vm270_vm5, %v519_v2 }
0x1288   :  { %v763_v3 = vpop.permute.xlu0 %762 }
0x1289   :  { %767 = vst.msk [vmem:[#allocation2 + $0xe] sm:$0x1] %vm270_vm5, %v763_v3 }
0x12c9   :  { %v845_v1 = vpop.permute.xlu2 %844 }
0x12ca   :  { %850 = vst.msk [vmem:[#allocation2 + $0x7] sm:$0x1] %vm270_vm5, %v845_v1 }
0x12d1   :  { %v679_v8 = vpop.permute.xlu2 %678  ;;  %v857_v9 = vld [vmem:[#allocation2] sm:$0xff] }
0x12d2   :  { %683 = vst.msk [vmem:[#allocation2 + $0xd] sm:$0x1] %vm270_vm5, %v679_v8  ;;  %957 = vmatmul.msk.f32.vlgmr.msra.gmra.mxu0 %vm119_vm0, %v857_v9 }
0x12d9   :  { %v853_v10 = vpop.permute.xlu2 %852 }
0x12da   :  { %856 = vst.msk [vmem:[#allocation12 - $0x6] sm:$0xc0] %vm855_vm6, %v853_v10 }
0x12db   :  { %921 = dma.vmem_to_hbm [thread:$0]  %s917_s23, 32, %s919_s26, [#allocation13]  }
0x12e2   :  { %v847_v11 = vpop.permute.xlu1 %846 }
0x12e3   :  { %851 = vst.msk [vmem:[#allocation2 + $0xf] sm:$0x1] %vm270_vm5, %v847_v11 }
0x12ea   :  { %v858_v23 = vld [vmem:[#allocation2 + $0x8] sm:$0xff] }
0x12eb   :  { %958 = vmatmul.msk.f32.gmra.mxu0 %vm119_vm0, %v858_v23 }
0x134f   :  { %v890_v13 = vpop.f32.mrf.mxu0 }
0x1350   :  { %v891_v14 = vadd.f32 %v979_v12, %v890_v13 }
0x1352   :  { %896 = vst.msk [vmem:[#allocation11] sm:$0xff] %vm119_vm0, %v891_v14 }
0x1368   :  { %v893_v15 = vpop.f32.mrf.mxu0 }
0x1369   :  { %v894_v16 = vadd.f32 %v979_v12, %v893_v15 }
0x136b   :  { %897 = vst.msk [vmem:[#allocation11 + $0x8] sm:$0xff] %vm119_vm0, %v894_v16 }
0x136c   :  { %910 = dma.vmem_to_hbm [thread:$0]  %s903_s28, 256, %s905_s11, [#allocation5], %s1183_s21, %s1183_s21, %s1184_s22  }
0x136d   :  { %1178 = dma.done.wait [#allocation5], 256  }
0x136e   :  { %1179 = vsyncadd [#allocation5], 4294967040 }
0x136f   :  { %1180 = dma.done.wait [#allocation13], 32  }
0x1370   :  { %1181 = vsyncadd [#allocation13], 4294967264 }
0x1371   :  { %930 = vsyncpa [#allocation4], 1 }
0x1372   :  { %931 = vsyncpa [#allocation7], 1 }
0x1373   :  { %932 = vsyncpa [#allocation10], 1 }
0x1374   :  { %933 = vsyncpa [#allocation5], 1 }
0x1375   :  { %934 = vsyncpa [#allocation13], 1 }

</bundles_post_ra>
